<compile_context>
chip_gen: v7x
topology: tpu7x:2x2x1
jax: 0.10.0
libtpu: 0.0.40
codegen_flags: <defaults>
</compile_context>

<pallas_src>
import numpy as np

import jax
import jax.numpy as jnp
from jax.experimental import pallas as pl
from jax.experimental.pallas import tpu as pltpu

F32 = jnp.float32


# --------------------------- trace-time constants --------------------------- #

def _build_tables():
    # Stage-1 maxpool-of-padded-conv: 4 window-corner gather matrices, stacked
    # into one (96, 40) block.  Source row 36 of y holds relu(b1) (the conv
    # zero-padding border); rows 37..39 of y / columns 37..39 are zero padding.
    def src1(h, w):
        return 6 * (h - 1) + (w - 1) if (1 <= h <= 6 and 1 <= w <= 6) else 36

    m1 = np.zeros((4, 24, 40), np.float32)
    for i in range(4):
        for j in range(4):
            corners = ((2 * i, 2 * j), (2 * i, 2 * j + 1),
                       (2 * i + 1, 2 * j), (2 * i + 1, 2 * j + 1))
            for c, (h, w) in enumerate(corners):
                m1[c, 4 * i + j, src1(h, w)] = 1.0

    # Stage-2: ReflectionPad2d(2) + conv zero-pad border + maxpool window
    # gathers folded into 4 matrices, stacked into (128, 24).  Source row 16
    # of y2 holds relu(b2) (border value).
    refl4 = (2, 1, 0, 1, 2, 3, 2, 1)          # reflect-pad-2 of length 4

    def src2(h, w):
        if h in (0, 9) or w in (0, 9):
            return 16
        return 4 * refl4[h - 1] + refl4[w - 1]

    m2 = np.zeros((4, 32, 24), np.float32)
    for i in range(5):
        for j in range(5):
            corners = ((2 * i, 2 * j), (2 * i, 2 * j + 1),
                       (2 * i + 1, 2 * j), (2 * i + 1, 2 * j + 1))
            for c, (h, w) in enumerate(corners):
                m2[c, 5 * i + j, src2(h, w)] = 1.0

    # Stage-3: 3x3 transposed-conv taps as 9 spatial shift matrices (32, 32).
    # core[m, n] = sum_{kh,kw} v3[m+1-kh, n+1-kw] @ W[kh, kw]   (odd outputs).
    pks = np.zeros((9, 32, 32), np.float32)
    for kh in range(3):
        for kw in range(3):
            for m in range(5):
                for n in range(5):
                    sm, sn = m + 1 - kh, n + 1 - kw
                    if 0 <= sm <= 4 and 0 <= sn <= 4:
                        pks[3 * kh + kw, 5 * m + n, 5 * sm + sn] = 1.0

    # Stage-4: scatter-into-odd-positions + ReflectionPad2d(2) +
    # AdaptiveAvgPool2d(8) collapsed into one (64, 32) matrix:
    #   pooled = A[:, :25] @ core25  +  A[:, 25] * relu(bt)
    P = np.zeros((8, 15), np.float64)          # adaptive pool weights, len 15
    for i in range(8):
        s = (i * 15) // 8
        e = -(-((i + 1) * 15) // 8)            # ceil
        P[i, s:e] = 1.0 / (e - s)
    refl11 = [2, 1] + list(range(11)) + [9, 8]  # reflect-pad-2 of length 11
    Q = np.zeros((8, 11), np.float64)
    for h in range(15):
        Q[:, refl11[h]] += P[:, h]
    R = Q[:, 1::2]                              # weights on odd (core) columns
    rR = R.sum(axis=1)
    aa = np.zeros((64, 32), np.float64)
    for i in range(8):
        for j in range(8):
            aa[8 * i + j, :25] = np.outer(R[i], R[j]).ravel()
            aa[8 * i + j, 25] = 1.0 - rR[i] * rR[j]   # weight on relu(bt) fill

    return (jnp.asarray(m1.reshape(96, 40)),
            jnp.asarray(m2.reshape(128, 24)),
            jnp.asarray(pks),
            jnp.asarray(aa.astype(np.float32)))


# --------------------------------- kernel ----------------------------------- #

def _fused_forward_kernel(x_ref, cw_ref, wk_ref, bt_ref, m1_ref, m2_ref,
                          pk_ref, aa_ref, o_ref):
    # ---- stage 1: conv1 (2->64, 1x1, pad=1) + relu + maxpool(2,2) ----------
    x = x_ref[...]                                    # (40, 2), rows 36..39 = 0
    w1 = cw_ref[0:2, :]                               # (2, 64)
    b1 = cw_ref[2:3, :]                               # (1, 64)
    y = jnp.maximum(x[:, 0:1] * w1[0:1, :] + x[:, 1:2] * w1[1:2, :] + b1, 0.0)
    # 4 window-corner gathers in one matmul; max of the 4 aligned blocks.
    g1 = jnp.dot(m1_ref[...], y, preferred_element_type=F32)      # (96, 64)
    v1 = jnp.maximum(jnp.maximum(g1[0:24], g1[24:48]),
                     jnp.maximum(g1[48:72], g1[72:96]))           # (24, 64)

    # ---- stage 2: reflect_pad(2) + conv (1x1, pad=1) + relu + maxpool ------
    # TODO(synk): the original module reuses self.conv (in_channels=2) on a
    # 64-channel tensor, which raises a RuntimeError in PyTorch; an
    # independent 64->64 1x1 conv (w2, b2) substitutes for that second call.
    w2 = cw_ref[8:72, :]                              # (64, 64)
    b2 = cw_ref[3:4, :]                               # (1, 64)
    y2 = jnp.maximum(jnp.dot(v1, w2, preferred_element_type=F32) + b2, 0.0)
    g2 = jnp.dot(m2_ref[...], y2, preferred_element_type=F32)     # (128, 64)
    v3 = jnp.maximum(jnp.maximum(g2[0:32], g2[32:64]),
                     jnp.maximum(g2[64:96], g2[96:128]))          # (32, 64)

    # ---- stage 3: ConvTranspose2d(64,128,3,stride=2,pad=1,dil=2) + relu ----
    # Only odd output positions receive kernel taps; 9 shift matrices build
    # each tap's operand, 9 MXU dots accumulate into f32.
    acc = jnp.zeros((32, 128), F32)
    for k in range(9):
        patch = jnp.dot(pk_ref[k], v3, preferred_element_type=F32)   # (32, 64)
        acc = acc + jnp.dot(patch, wk_ref[k], preferred_element_type=F32)
    core = jnp.maximum(acc + bt_ref[...], 0.0)        # rows >= 25 hold relu(bt)

    # ---- stage 4: reflect_pad(2) + adaptive_avg_pool(8) + ELU + tanh -------
    pooled = jnp.dot(aa_ref[...], core, preferred_element_type=F32)  # (64, 128)
    neg = jnp.exp(jnp.minimum(pooled, 0.0)) - 1.0     # ELU(alpha=1), clamped exp
    z = jnp.where(pooled > 0.0, pooled, neg)
    o_ref[...] = jnp.tanh(z)                          # single lane-dense store


# ------------------------------- wrapper ------------------------------------ #

def fused_forward(x40, params):
    return pl.pallas_call(
        _fused_forward_kernel,
        out_shape=jax.ShapeDtypeStruct((64, 128), F32),
        grid=(1,),
        in_specs=[
            pl.BlockSpec((40, 2), lambda i: (0, 0)),
            pl.BlockSpec((72, 64), lambda i: (0, 0)),
            pl.BlockSpec((9, 64, 128), lambda i: (0, 0, 0)),
            pl.BlockSpec((1, 128), lambda i: (0, 0)),
            pl.BlockSpec((96, 40), lambda i: (0, 0)),
            pl.BlockSpec((128, 24), lambda i: (0, 0)),
            pl.BlockSpec((9, 32, 32), lambda i: (0, 0, 0)),
            pl.BlockSpec((64, 32), lambda i: (0, 0)),
        ],
        out_specs=pl.BlockSpec((64, 128), lambda i: (0, 0)),
        compiler_params=pltpu.CompilerParams(
            dimension_semantics=("arbitrary",)),
    )(x40, params['cw'], params['wk'], params['bt'],
      params['m1s'], params['m2s'], params['pks'], params['aa'])


def init_params(key):
    k = jax.random.split(key, 6)
    # Conv2d(2, 64, 1, padding=1): weight (64,2,1,1) -> (2,64), bias (64,)
    w1 = jax.random.normal(k[0], (2, 64), F32) * 0.3
    b1 = jax.random.normal(k[1], (64,), F32) * 0.1
    # Substituted 64->64 1x1 conv for the invalid self.conv reuse (see kernel).
    w2 = jax.random.normal(k[2], (64, 64), F32) * 0.1
    b2 = jax.random.normal(k[3], (64,), F32) * 0.1
    # ConvTranspose2d(64, 128, 3, ...): weight (in=64, out=128, 3, 3), relaid
    # out once at init to wk[3*kh+kw] = wt[:, :, kh, kw]  -> (9, 64, 128).
    wt = jax.random.normal(k[4], (64, 128, 3, 3), F32) * 0.05
    bt = jax.random.normal(k[5], (128,), F32) * 0.1

    # Small parameters packed into one 8-aligned (72, 64) block.
    cw = jnp.zeros((72, 64), F32)
    cw = cw.at[0:2].set(w1).at[2].set(b1).at[3].set(b2).at[8:72].set(w2)

    m1s, m2s, pks, aa = _build_tables()
    return dict(cw=cw,
                wk=jnp.transpose(wt, (2, 3, 0, 1)).reshape(9, 64, 128),
                bt=bt.reshape(1, 128),
                m1s=m1s, m2s=m2s, pks=pks, aa=aa)


@jax.jit
def model_forward(x_nchw, params):
    # NCHW (1,2,6,6) -> flattened HWC rows, zero-padded to 40 rows (rows 36..39
    # feed the constant gather matrices' zero columns / relu(bias) border row).
    x2d = jnp.transpose(x_nchw, (0, 2, 3, 1)).reshape(36, 2)
    x40 = jnp.concatenate([x2d, jnp.zeros((4, 2), F32)], axis=0)
    out = fused_forward(x40, params)                  # (64, 128) = (H*W, C)
    return jnp.transpose(out.reshape(8, 8, 128), (2, 0, 1))[None]   # (1,128,8,8)


if __name__ == "__main__":
    key = jax.random.PRNGKey(0)
    kx, kp = jax.random.split(key)
    x1 = jax.random.normal(kx, (1, 2, 6, 6), F32)     # matches the torch input
    params = init_params(kp)

    out = model_forward(x1, params)
    jax.block_until_ready(out)
    assert out.shape == (1, 128, 8, 8), out.shape
    assert bool(jnp.all(jnp.isfinite(out)))
    print("KERNEL_OK")
</pallas_src>

<mosaic_0001>
module attributes {stable_mosaic.version = 11 : i64} {
  func.func @_fused_forward_kernel(%arg0: i32, %arg1: memref<40x2xf32, #tpu.memory_space<vmem>>, %arg2: memref<72x64xf32, #tpu.memory_space<vmem>>, %arg3: memref<9x64x128xf32, #tpu.memory_space<vmem>>, %arg4: memref<1x128xf32, #tpu.memory_space<vmem>>, %arg5: memref<96x40xf32, #tpu.memory_space<vmem>>, %arg6: memref<128x24xf32, #tpu.memory_space<vmem>>, %arg7: memref<9x32x32xf32, #tpu.memory_space<vmem>>, %arg8: memref<64x32xf32, #tpu.memory_space<vmem>>, %arg9: memref<64x128xf32, #tpu.memory_space<vmem>>) attributes {dimension_semantics = [#tpu.dimension_semantics<arbitrary>], iteration_bounds = array<i64: 1>, scalar_prefetch = 0 : i64, scratch_operands = 0 : i64, tpu.core_type = #tpu.core_type<tc>, window_params = [{pipeline_mode = #tpu.pipeline_mode<synchronous>, transform_indices = @transform_0, window_bounds = array<i64: 40, 2>}, {pipeline_mode = #tpu.pipeline_mode<synchronous>, transform_indices = @transform_1, window_bounds = array<i64: 72, 64>}, {pipeline_mode = #tpu.pipeline_mode<synchronous>, transform_indices = @transform_2, window_bounds = array<i64: 9, 64, 128>}, {pipeline_mode = #tpu.pipeline_mode<synchronous>, transform_indices = @transform_3, window_bounds = array<i64: 1, 128>}, {pipeline_mode = #tpu.pipeline_mode<synchronous>, transform_indices = @transform_4, window_bounds = array<i64: 96, 40>}, {pipeline_mode = #tpu.pipeline_mode<synchronous>, transform_indices = @transform_5, window_bounds = array<i64: 128, 24>}, {pipeline_mode = #tpu.pipeline_mode<synchronous>, transform_indices = @transform_6, window_bounds = array<i64: 9, 32, 32>}, {pipeline_mode = #tpu.pipeline_mode<synchronous>, transform_indices = @transform_7, window_bounds = array<i64: 64, 32>}, {pipeline_mode = #tpu.pipeline_mode<synchronous>, transform_indices = @transform_8, window_bounds = array<i64: 64, 128>}]} {
    %c0 = arith.constant 0 : index
    %c0_0 = arith.constant 0 : index
    %0 = vector.load %arg1[%c0, %c0_0] : memref<40x2xf32, #tpu.memory_space<vmem>>, vector<40x2xf32>
    %c0_1 = arith.constant 0 : index
    %c0_2 = arith.constant 0 : index
    %1 = vector.load %arg2[%c0_1, %c0_2] : memref<72x64xf32, #tpu.memory_space<vmem>>, vector<2x64xf32>
    %c2 = arith.constant 2 : index
    %c0_3 = arith.constant 0 : index
    %2 = vector.load %arg2[%c2, %c0_3] : memref<72x64xf32, #tpu.memory_space<vmem>>, vector<1x64xf32>
    %3 = vector.extract_strided_slice %0 {offsets = [0, 0], sizes = [40, 1], strides = [1, 1]} : vector<40x2xf32> to vector<40x1xf32>
    %4 = vector.extract_strided_slice %1 {offsets = [0, 0], sizes = [1, 64], strides = [1, 1]} : vector<2x64xf32> to vector<1x64xf32>
    %5 = vector.broadcast %3 : vector<40x1xf32> to vector<40x64xf32>
    %6 = vector.broadcast %4 : vector<1x64xf32> to vector<40x64xf32>
    %7 = arith.mulf %5, %6 : vector<40x64xf32>
    %8 = vector.extract_strided_slice %0 {offsets = [0, 1], sizes = [40, 1], strides = [1, 1]} : vector<40x2xf32> to vector<40x1xf32>
    %9 = vector.extract_strided_slice %1 {offsets = [1, 0], sizes = [1, 64], strides = [1, 1]} : vector<2x64xf32> to vector<1x64xf32>
    %10 = vector.broadcast %8 : vector<40x1xf32> to vector<40x64xf32>
    %11 = vector.broadcast %9 : vector<1x64xf32> to vector<40x64xf32>
    %12 = arith.mulf %10, %11 : vector<40x64xf32>
    %13 = arith.addf %7, %12 : vector<40x64xf32>
    %14 = vector.broadcast %2 : vector<1x64xf32> to vector<40x64xf32>
    %15 = arith.addf %13, %14 : vector<40x64xf32>
    %cst = arith.constant 0.000000e+00 : f32
    %16 = vector.broadcast %cst : f32 to vector<40x64xf32>
    %17 = arith.maximumf %15, %16 : vector<40x64xf32>
    %c0_4 = arith.constant 0 : index
    %c0_5 = arith.constant 0 : index
    %18 = vector.load %arg5[%c0_4, %c0_5] : memref<96x40xf32, #tpu.memory_space<vmem>>, vector<96x40xf32>
    %cst_6 = arith.constant dense<0.000000e+00> : vector<96x64xf32>
    %19 = tpu.matmul %18, %17, %cst_6 {dimension_numbers = #tpu.dot_dimension_numbers<[1], [0], [0], [1], [0, 0, 1, 1], [], []>} : vector<96x40xf32>, vector<40x64xf32>, vector<96x64xf32> -> vector<96x64xf32>
    %20 = vector.extract_strided_slice %19 {offsets = [0, 0], sizes = [24, 64], strides = [1, 1]} : vector<96x64xf32> to vector<24x64xf32>
    %21 = vector.extract_strided_slice %19 {offsets = [24, 0], sizes = [24, 64], strides = [1, 1]} : vector<96x64xf32> to vector<24x64xf32>
    %22 = arith.maximumf %20, %21 : vector<24x64xf32>
    %23 = vector.extract_strided_slice %19 {offsets = [48, 0], sizes = [24, 64], strides = [1, 1]} : vector<96x64xf32> to vector<24x64xf32>
    %24 = vector.extract_strided_slice %19 {offsets = [72, 0], sizes = [24, 64], strides = [1, 1]} : vector<96x64xf32> to vector<24x64xf32>
    %25 = arith.maximumf %23, %24 : vector<24x64xf32>
    %26 = arith.maximumf %22, %25 : vector<24x64xf32>
    %c8 = arith.constant 8 : index
    %c0_7 = arith.constant 0 : index
    %27 = vector.load %arg2[%c8, %c0_7] : memref<72x64xf32, #tpu.memory_space<vmem>>, vector<64x64xf32>
    %c3 = arith.constant 3 : index
    %c0_8 = arith.constant 0 : index
    %28 = vector.load %arg2[%c3, %c0_8] : memref<72x64xf32, #tpu.memory_space<vmem>>, vector<1x64xf32>
    %cst_9 = arith.constant dense<0.000000e+00> : vector<24x64xf32>
    %29 = tpu.matmul %26, %27, %cst_9 {dimension_numbers = #tpu.dot_dimension_numbers<[1], [0], [0], [1], [0, 0, 1, 1], [], []>} : vector<24x64xf32>, vector<64x64xf32>, vector<24x64xf32> -> vector<24x64xf32>
    %30 = vector.broadcast %28 : vector<1x64xf32> to vector<24x64xf32>
    %31 = arith.addf %29, %30 : vector<24x64xf32>
    %cst_10 = arith.constant 0.000000e+00 : f32
    %32 = vector.broadcast %cst_10 : f32 to vector<24x64xf32>
    %33 = arith.maximumf %31, %32 : vector<24x64xf32>
    %c0_11 = arith.constant 0 : index
    %c0_12 = arith.constant 0 : index
    %34 = vector.load %arg6[%c0_11, %c0_12] : memref<128x24xf32, #tpu.memory_space<vmem>>, vector<128x24xf32>
    %cst_13 = arith.constant dense<0.000000e+00> : vector<128x64xf32>
    %35 = tpu.matmul %34, %33, %cst_13 {dimension_numbers = #tpu.dot_dimension_numbers<[1], [0], [0], [1], [0, 0, 1, 1], [], []>} : vector<128x24xf32>, vector<24x64xf32>, vector<128x64xf32> -> vector<128x64xf32>
    %36 = vector.extract_strided_slice %35 {offsets = [0, 0], sizes = [32, 64], strides = [1, 1]} : vector<128x64xf32> to vector<32x64xf32>
    %37 = vector.extract_strided_slice %35 {offsets = [32, 0], sizes = [32, 64], strides = [1, 1]} : vector<128x64xf32> to vector<32x64xf32>
    %38 = arith.maximumf %36, %37 : vector<32x64xf32>
    %39 = vector.extract_strided_slice %35 {offsets = [64, 0], sizes = [32, 64], strides = [1, 1]} : vector<128x64xf32> to vector<32x64xf32>
    %40 = vector.extract_strided_slice %35 {offsets = [96, 0], sizes = [32, 64], strides = [1, 1]} : vector<128x64xf32> to vector<32x64xf32>
    %41 = arith.maximumf %39, %40 : vector<32x64xf32>
    %42 = arith.maximumf %38, %41 : vector<32x64xf32>
    %cst_14 = arith.constant 0.000000e+00 : f32
    %43 = vector.broadcast %cst_14 : f32 to vector<32x128xf32>
    %c0_15 = arith.constant 0 : index
    %c0_16 = arith.constant 0 : index
    %c0_17 = arith.constant 0 : index
    %44 = vector.load %arg7[%c0_15, %c0_16, %c0_17] : memref<9x32x32xf32, #tpu.memory_space<vmem>>, vector<1x32x32xf32>
    %45 = vector.shape_cast %44 : vector<1x32x32xf32> to vector<32x32xf32>
    %cst_18 = arith.constant dense<0.000000e+00> : vector<32x64xf32>
    %46 = tpu.matmul %45, %42, %cst_18 {dimension_numbers = #tpu.dot_dimension_numbers<[1], [0], [0], [1], [0, 0, 1, 1], [], []>} : vector<32x32xf32>, vector<32x64xf32>, vector<32x64xf32> -> vector<32x64xf32>
    %c0_19 = arith.constant 0 : index
    %c0_20 = arith.constant 0 : index
    %c0_21 = arith.constant 0 : index
    %47 = vector.load %arg3[%c0_19, %c0_20, %c0_21] : memref<9x64x128xf32, #tpu.memory_space<vmem>>, vector<1x64x128xf32>
    %48 = vector.shape_cast %47 : vector<1x64x128xf32> to vector<64x128xf32>
    %cst_22 = arith.constant dense<0.000000e+00> : vector<32x128xf32>
    %49 = tpu.matmul %46, %48, %cst_22 {dimension_numbers = #tpu.dot_dimension_numbers<[1], [0], [0], [1], [0, 0, 1, 1], [], []>} : vector<32x64xf32>, vector<64x128xf32>, vector<32x128xf32> -> vector<32x128xf32>
    %50 = arith.addf %43, %49 : vector<32x128xf32>
    %c1 = arith.constant 1 : index
    %c0_23 = arith.constant 0 : index
    %c0_24 = arith.constant 0 : index
    %51 = vector.load %arg7[%c1, %c0_23, %c0_24] : memref<9x32x32xf32, #tpu.memory_space<vmem>>, vector<1x32x32xf32>
    %52 = vector.shape_cast %51 : vector<1x32x32xf32> to vector<32x32xf32>
    %cst_25 = arith.constant dense<0.000000e+00> : vector<32x64xf32>
    %53 = tpu.matmul %52, %42, %cst_25 {dimension_numbers = #tpu.dot_dimension_numbers<[1], [0], [0], [1], [0, 0, 1, 1], [], []>} : vector<32x32xf32>, vector<32x64xf32>, vector<32x64xf32> -> vector<32x64xf32>
    %c1_26 = arith.constant 1 : index
    %c0_27 = arith.constant 0 : index
    %c0_28 = arith.constant 0 : index
    %54 = vector.load %arg3[%c1_26, %c0_27, %c0_28] : memref<9x64x128xf32, #tpu.memory_space<vmem>>, vector<1x64x128xf32>
    %55 = vector.shape_cast %54 : vector<1x64x128xf32> to vector<64x128xf32>
    %cst_29 = arith.constant dense<0.000000e+00> : vector<32x128xf32>
    %56 = tpu.matmul %53, %55, %cst_29 {dimension_numbers = #tpu.dot_dimension_numbers<[1], [0], [0], [1], [0, 0, 1, 1], [], []>} : vector<32x64xf32>, vector<64x128xf32>, vector<32x128xf32> -> vector<32x128xf32>
    %57 = arith.addf %50, %56 : vector<32x128xf32>
    %c2_30 = arith.constant 2 : index
    %c0_31 = arith.constant 0 : index
    %c0_32 = arith.constant 0 : index
    %58 = vector.load %arg7[%c2_30, %c0_31, %c0_32] : memref<9x32x32xf32, #tpu.memory_space<vmem>>, vector<1x32x32xf32>
    %59 = vector.shape_cast %58 : vector<1x32x32xf32> to vector<32x32xf32>
    %cst_33 = arith.constant dense<0.000000e+00> : vector<32x64xf32>
    %60 = tpu.matmul %59, %42, %cst_33 {dimension_numbers = #tpu.dot_dimension_numbers<[1], [0], [0], [1], [0, 0, 1, 1], [], []>} : vector<32x32xf32>, vector<32x64xf32>, vector<32x64xf32> -> vector<32x64xf32>
    %c2_34 = arith.constant 2 : index
    %c0_35 = arith.constant 0 : index
    %c0_36 = arith.constant 0 : index
    %61 = vector.load %arg3[%c2_34, %c0_35, %c0_36] : memref<9x64x128xf32, #tpu.memory_space<vmem>>, vector<1x64x128xf32>
    %62 = vector.shape_cast %61 : vector<1x64x128xf32> to vector<64x128xf32>
    %cst_37 = arith.constant dense<0.000000e+00> : vector<32x128xf32>
    %63 = tpu.matmul %60, %62, %cst_37 {dimension_numbers = #tpu.dot_dimension_numbers<[1], [0], [0], [1], [0, 0, 1, 1], [], []>} : vector<32x64xf32>, vector<64x128xf32>, vector<32x128xf32> -> vector<32x128xf32>
    %64 = arith.addf %57, %63 : vector<32x128xf32>
    %c3_38 = arith.constant 3 : index
    %c0_39 = arith.constant 0 : index
    %c0_40 = arith.constant 0 : index
    %65 = vector.load %arg7[%c3_38, %c0_39, %c0_40] : memref<9x32x32xf32, #tpu.memory_space<vmem>>, vector<1x32x32xf32>
    %66 = vector.shape_cast %65 : vector<1x32x32xf32> to vector<32x32xf32>
    %cst_41 = arith.constant dense<0.000000e+00> : vector<32x64xf32>
    %67 = tpu.matmul %66, %42, %cst_41 {dimension_numbers = #tpu.dot_dimension_numbers<[1], [0], [0], [1], [0, 0, 1, 1], [], []>} : vector<32x32xf32>, vector<32x64xf32>, vector<32x64xf32> -> vector<32x64xf32>
    %c3_42 = arith.constant 3 : index
    %c0_43 = arith.constant 0 : index
    %c0_44 = arith.constant 0 : index
    %68 = vector.load %arg3[%c3_42, %c0_43, %c0_44] : memref<9x64x128xf32, #tpu.memory_space<vmem>>, vector<1x64x128xf32>
    %69 = vector.shape_cast %68 : vector<1x64x128xf32> to vector<64x128xf32>
    %cst_45 = arith.constant dense<0.000000e+00> : vector<32x128xf32>
    %70 = tpu.matmul %67, %69, %cst_45 {dimension_numbers = #tpu.dot_dimension_numbers<[1], [0], [0], [1], [0, 0, 1, 1], [], []>} : vector<32x64xf32>, vector<64x128xf32>, vector<32x128xf32> -> vector<32x128xf32>
    %71 = arith.addf %64, %70 : vector<32x128xf32>
    %c4 = arith.constant 4 : index
    %c0_46 = arith.constant 0 : index
    %c0_47 = arith.constant 0 : index
    %72 = vector.load %arg7[%c4, %c0_46, %c0_47] : memref<9x32x32xf32, #tpu.memory_space<vmem>>, vector<1x32x32xf32>
    %73 = vector.shape_cast %72 : vector<1x32x32xf32> to vector<32x32xf32>
    %cst_48 = arith.constant dense<0.000000e+00> : vector<32x64xf32>
    %74 = tpu.matmul %73, %42, %cst_48 {dimension_numbers = #tpu.dot_dimension_numbers<[1], [0], [0], [1], [0, 0, 1, 1], [], []>} : vector<32x32xf32>, vector<32x64xf32>, vector<32x64xf32> -> vector<32x64xf32>
    %c4_49 = arith.constant 4 : index
    %c0_50 = arith.constant 0 : index
    %c0_51 = arith.constant 0 : index
    %75 = vector.load %arg3[%c4_49, %c0_50, %c0_51] : memref<9x64x128xf32, #tpu.memory_space<vmem>>, vector<1x64x128xf32>
    %76 = vector.shape_cast %75 : vector<1x64x128xf32> to vector<64x128xf32>
    %cst_52 = arith.constant dense<0.000000e+00> : vector<32x128xf32>
    %77 = tpu.matmul %74, %76, %cst_52 {dimension_numbers = #tpu.dot_dimension_numbers<[1], [0], [0], [1], [0, 0, 1, 1], [], []>} : vector<32x64xf32>, vector<64x128xf32>, vector<32x128xf32> -> vector<32x128xf32>
    %78 = arith.addf %71, %77 : vector<32x128xf32>
    %c5 = arith.constant 5 : index
    %c0_53 = arith.constant 0 : index
    %c0_54 = arith.constant 0 : index
    %79 = vector.load %arg7[%c5, %c0_53, %c0_54] : memref<9x32x32xf32, #tpu.memory_space<vmem>>, vector<1x32x32xf32>
    %80 = vector.shape_cast %79 : vector<1x32x32xf32> to vector<32x32xf32>
    %cst_55 = arith.constant dense<0.000000e+00> : vector<32x64xf32>
    %81 = tpu.matmul %80, %42, %cst_55 {dimension_numbers = #tpu.dot_dimension_numbers<[1], [0], [0], [1], [0, 0, 1, 1], [], []>} : vector<32x32xf32>, vector<32x64xf32>, vector<32x64xf32> -> vector<32x64xf32>
    %c5_56 = arith.constant 5 : index
    %c0_57 = arith.constant 0 : index
    %c0_58 = arith.constant 0 : index
    %82 = vector.load %arg3[%c5_56, %c0_57, %c0_58] : memref<9x64x128xf32, #tpu.memory_space<vmem>>, vector<1x64x128xf32>
    %83 = vector.shape_cast %82 : vector<1x64x128xf32> to vector<64x128xf32>
    %cst_59 = arith.constant dense<0.000000e+00> : vector<32x128xf32>
    %84 = tpu.matmul %81, %83, %cst_59 {dimension_numbers = #tpu.dot_dimension_numbers<[1], [0], [0], [1], [0, 0, 1, 1], [], []>} : vector<32x64xf32>, vector<64x128xf32>, vector<32x128xf32> -> vector<32x128xf32>
    %85 = arith.addf %78, %84 : vector<32x128xf32>
    %c6 = arith.constant 6 : index
    %c0_60 = arith.constant 0 : index
    %c0_61 = arith.constant 0 : index
    %86 = vector.load %arg7[%c6, %c0_60, %c0_61] : memref<9x32x32xf32, #tpu.memory_space<vmem>>, vector<1x32x32xf32>
    %87 = vector.shape_cast %86 : vector<1x32x32xf32> to vector<32x32xf32>
    %cst_62 = arith.constant dense<0.000000e+00> : vector<32x64xf32>
    %88 = tpu.matmul %87, %42, %cst_62 {dimension_numbers = #tpu.dot_dimension_numbers<[1], [0], [0], [1], [0, 0, 1, 1], [], []>} : vector<32x32xf32>, vector<32x64xf32>, vector<32x64xf32> -> vector<32x64xf32>
    %c6_63 = arith.constant 6 : index
    %c0_64 = arith.constant 0 : index
    %c0_65 = arith.constant 0 : index
    %89 = vector.load %arg3[%c6_63, %c0_64, %c0_65] : memref<9x64x128xf32, #tpu.memory_space<vmem>>, vector<1x64x128xf32>
    %90 = vector.shape_cast %89 : vector<1x64x128xf32> to vector<64x128xf32>
    %cst_66 = arith.constant dense<0.000000e+00> : vector<32x128xf32>
    %91 = tpu.matmul %88, %90, %cst_66 {dimension_numbers = #tpu.dot_dimension_numbers<[1], [0], [0], [1], [0, 0, 1, 1], [], []>} : vector<32x64xf32>, vector<64x128xf32>, vector<32x128xf32> -> vector<32x128xf32>
    %92 = arith.addf %85, %91 : vector<32x128xf32>
    %c7 = arith.constant 7 : index
    %c0_67 = arith.constant 0 : index
    %c0_68 = arith.constant 0 : index
    %93 = vector.load %arg7[%c7, %c0_67, %c0_68] : memref<9x32x32xf32, #tpu.memory_space<vmem>>, vector<1x32x32xf32>
    %94 = vector.shape_cast %93 : vector<1x32x32xf32> to vector<32x32xf32>
    %cst_69 = arith.constant dense<0.000000e+00> : vector<32x64xf32>
    %95 = tpu.matmul %94, %42, %cst_69 {dimension_numbers = #tpu.dot_dimension_numbers<[1], [0], [0], [1], [0, 0, 1, 1], [], []>} : vector<32x32xf32>, vector<32x64xf32>, vector<32x64xf32> -> vector<32x64xf32>
    %c7_70 = arith.constant 7 : index
    %c0_71 = arith.constant 0 : index
    %c0_72 = arith.constant 0 : index
    %96 = vector.load %arg3[%c7_70, %c0_71, %c0_72] : memref<9x64x128xf32, #tpu.memory_space<vmem>>, vector<1x64x128xf32>
    %97 = vector.shape_cast %96 : vector<1x64x128xf32> to vector<64x128xf32>
    %cst_73 = arith.constant dense<0.000000e+00> : vector<32x128xf32>
    %98 = tpu.matmul %95, %97, %cst_73 {dimension_numbers = #tpu.dot_dimension_numbers<[1], [0], [0], [1], [0, 0, 1, 1], [], []>} : vector<32x64xf32>, vector<64x128xf32>, vector<32x128xf32> -> vector<32x128xf32>
    %99 = arith.addf %92, %98 : vector<32x128xf32>
    %c8_74 = arith.constant 8 : index
    %c0_75 = arith.constant 0 : index
    %c0_76 = arith.constant 0 : index
    %100 = vector.load %arg7[%c8_74, %c0_75, %c0_76] : memref<9x32x32xf32, #tpu.memory_space<vmem>>, vector<1x32x32xf32>
    %101 = vector.shape_cast %100 : vector<1x32x32xf32> to vector<32x32xf32>
    %cst_77 = arith.constant dense<0.000000e+00> : vector<32x64xf32>
    %102 = tpu.matmul %101, %42, %cst_77 {dimension_numbers = #tpu.dot_dimension_numbers<[1], [0], [0], [1], [0, 0, 1, 1], [], []>} : vector<32x32xf32>, vector<32x64xf32>, vector<32x64xf32> -> vector<32x64xf32>
    %c8_78 = arith.constant 8 : index
    %c0_79 = arith.constant 0 : index
    %c0_80 = arith.constant 0 : index
    %103 = vector.load %arg3[%c8_78, %c0_79, %c0_80] : memref<9x64x128xf32, #tpu.memory_space<vmem>>, vector<1x64x128xf32>
    %104 = vector.shape_cast %103 : vector<1x64x128xf32> to vector<64x128xf32>
    %cst_81 = arith.constant dense<0.000000e+00> : vector<32x128xf32>
    %105 = tpu.matmul %102, %104, %cst_81 {dimension_numbers = #tpu.dot_dimension_numbers<[1], [0], [0], [1], [0, 0, 1, 1], [], []>} : vector<32x64xf32>, vector<64x128xf32>, vector<32x128xf32> -> vector<32x128xf32>
    %106 = arith.addf %99, %105 : vector<32x128xf32>
    %c0_82 = arith.constant 0 : index
    %c0_83 = arith.constant 0 : index
    %107 = vector.load %arg4[%c0_82, %c0_83] : memref<1x128xf32, #tpu.memory_space<vmem>>, vector<1x128xf32>
    %108 = vector.broadcast %107 : vector<1x128xf32> to vector<32x128xf32>
    %109 = arith.addf %106, %108 : vector<32x128xf32>
    %cst_84 = arith.constant 0.000000e+00 : f32
    %110 = vector.broadcast %cst_84 : f32 to vector<32x128xf32>
    %111 = arith.maximumf %109, %110 : vector<32x128xf32>
    %c0_85 = arith.constant 0 : index
    %c0_86 = arith.constant 0 : index
    %112 = vector.load %arg8[%c0_85, %c0_86] : memref<64x32xf32, #tpu.memory_space<vmem>>, vector<64x32xf32>
    %cst_87 = arith.constant dense<0.000000e+00> : vector<64x128xf32>
    %113 = tpu.matmul %112, %111, %cst_87 {dimension_numbers = #tpu.dot_dimension_numbers<[1], [0], [0], [1], [0, 0, 1, 1], [], []>} : vector<64x32xf32>, vector<32x128xf32>, vector<64x128xf32> -> vector<64x128xf32>
    %cst_88 = arith.constant 0.000000e+00 : f32
    %114 = vector.broadcast %cst_88 : f32 to vector<64x128xf32>
    %115 = arith.minimumf %113, %114 : vector<64x128xf32>
    %116 = math.exp %115 : vector<64x128xf32>
    %cst_89 = arith.constant 1.000000e+00 : f32
    %117 = vector.broadcast %cst_89 : f32 to vector<64x128xf32>
    %118 = arith.subf %116, %117 : vector<64x128xf32>
    %cst_90 = arith.constant 0.000000e+00 : f32
    %119 = vector.broadcast %cst_90 : f32 to vector<64x128xf32>
    %120 = arith.cmpf ogt, %113, %119 : vector<64x128xf32>
    %121 = arith.select %120, %113, %118 : vector<64x128xi1>, vector<64x128xf32>
    %122 = math.tanh %121 : vector<64x128xf32>
    %c0_91 = arith.constant 0 : index
    %c0_92 = arith.constant 0 : index
    %123 = vector.load %arg9[%c0_91, %c0_92] : memref<64x128xf32, #tpu.memory_space<vmem>>, vector<64x128xf32>
    tpu.vector_store %arg9[%c0_91, %c0_92], %122 {strides = array<i32>} : memref<64x128xf32, #tpu.memory_space<vmem>>, vector<64x128xf32>,
    return
  }
  func.func @transform_0(%arg0: i32) -> (i32, i32) {
    %c0_i32 = arith.constant 0 : i32
    %c0_i32_0 = arith.constant 0 : i32
    %c0_i32_1 = arith.constant 0 : i32
    return %c0_i32, %c0_i32_0 : i32, i32
  }
  func.func @transform_1(%arg0: i32) -> (i32, i32) {
    %c0_i32 = arith.constant 0 : i32
    %c0_i32_0 = arith.constant 0 : i32
    %c0_i32_1 = arith.constant 0 : i32
    return %c0_i32, %c0_i32_0 : i32, i32
  }
  func.func @transform_2(%arg0: i32) -> (i32, i32, i32) {
    %c0_i32 = arith.constant 0 : i32
    %c0_i32_0 = arith.constant 0 : i32
    %c0_i32_1 = arith.constant 0 : i32
    %c0_i32_2 = arith.constant 0 : i32
    return %c0_i32, %c0_i32_0, %c0_i32_1 : i32, i32, i32
  }
  func.func @transform_3(%arg0: i32) -> (i32, i32) {
    %c0_i32 = arith.constant 0 : i32
    %c0_i32_0 = arith.constant 0 : i32
    %c0_i32_1 = arith.constant 0 : i32
    return %c0_i32, %c0_i32_0 : i32, i32
  }
  func.func @transform_4(%arg0: i32) -> (i32, i32) {
    %c0_i32 = arith.constant 0 : i32
    %c0_i32_0 = arith.constant 0 : i32
    %c0_i32_1 = arith.constant 0 : i32
    return %c0_i32, %c0_i32_0 : i32, i32
  }
  func.func @transform_5(%arg0: i32) -> (i32, i32) {
    %c0_i32 = arith.constant 0 : i32
    %c0_i32_0 = arith.constant 0 : i32
    %c0_i32_1 = arith.constant 0 : i32
    return %c0_i32, %c0_i32_0 : i32, i32
  }
  func.func @transform_6(%arg0: i32) -> (i32, i32, i32) {
    %c0_i32 = arith.constant 0 : i32
    %c0_i32_0 = arith.constant 0 : i32
    %c0_i32_1 = arith.constant 0 : i32
    %c0_i32_2 = arith.constant 0 : i32
    return %c0_i32, %c0_i32_0, %c0_i32_1 : i32, i32, i32
  }
  func.func @transform_7(%arg0: i32) -> (i32, i32) {
    %c0_i32 = arith.constant 0 : i32
    %c0_i32_0 = arith.constant 0 : i32
    %c0_i32_1 = arith.constant 0 : i32
    return %c0_i32, %c0_i32_0 : i32, i32
  }
  func.func @transform_8(%arg0: i32) -> (i32, i32) {
    %c0_i32 = arith.constant 0 : i32
    %c0_i32_0 = arith.constant 0 : i32
    %c0_i32_1 = arith.constant 0 : i32
    return %c0_i32, %c0_i32_0 : i32, i32
  }
}

</mosaic_0001>

<bundles_post_ra>
// kernel: model_forward.1
= control target key start
LH: loop header
LB: loop body
LE: loop exit
PB: predicated region body
PF: predicated region fallthrough
CT: control target
= control target key end

     0   :  { %13 = vsyncpa [#allocation3], 0  ;;  %s4643_s0 = inlined_call_operand.vmem [shape: f32[40,2], index: 0, kind: input, shape index: {}]   ;;  %s4644_s1 = inlined_call_operand.vmem [shape: f32[72,64], index: 1, kind: input, shape index: {}]   ;;  %s4645_s2 = inlined_call_operand.vmem [shape: f32[9,64,128], index: 2, kind: input, shape index: {}]   ;;  %s4646_s3 = inlined_call_operand.vmem [shape: f32[1,128], index: 3, kind: input, shape index: {}]   ;;  %s4647_s4 = inlined_call_operand.vmem [shape: f32[96,40], index: 4, kind: input, shape index: {}]   ;;  %s4648_s5 = inlined_call_operand.vmem [shape: f32[128,24], index: 5, kind: input, shape index: {}]   ;;  %s4649_s6 = inlined_call_operand.hbm [shape: f32[9,32,32], index: 6, kind: input, shape index: {}]   ;;  %s4650_s7 = inlined_call_operand.vmem [shape: f32[64,32], index: 7, kind: input, shape index: {}]   ;;  %s4651_s8 = inlined_call_operand.hbm [shape: f32[64,128], index: 8, kind: output, shape index: {}]  }
   0x1   :  { %14 = vsyncpa [#allocation4], 0  ;;  %s4003_s27 = smov [#allocation2]   ;;  %s3955_s9 = scalar_lea.hbm %s4649_s6, 4608 }
   0x2   :  { %s32_s28 = sshll.u32 %s4003_s27, 4  ;;  %p3956_p0 = scmp.ne.s32.totalorder %s4649_s6, %s3955_s9  ;;  %s33_s28 = int_to_ptr.vmem [resolvable:$true] %s32_s28 }
   0x3   :  { %p3959_p1 = scmp.lt.u32.totalorder %s3955_s9, %s4649_s6 }
   0x5   :  { %p3961_p2 = pnand %p3959_p1, %p3956_p0 }
   0x7   :  { %3964 = shalt.err (!%p3961_p2)
}
   0x8   :  { %s3965_s14 = scalar_lea.vmem %s33_s28, 4608  ;;  %p3970_p4 = scmp.lt.s32.totalorder %s33_s28, %s33_s28 }
   0x9   :  { %p3966_p3 = scmp.ne.s32.totalorder %s33_s28, %s3965_s14  ;;  %p3971_p5 = scmp.lt.s32.totalorder %s3965_s14, %s3965_s14 }
   0xb   :  { %p3972_p6 = por %p3971_p5, %p3970_p4 }
   0xd   :  { %p3973_p7 = pnand %p3972_p6, %p3966_p3 }
   0xf   :  { %3976 = shalt.err (!%p3973_p7)
}
  0x10   :  { %s4004_s15 = smov 128   ;;  %s4005_s16 = smov 8  }
  0x11   :  { %38 = dma.hbm_to_vmem [thread:$0]  %s4649_s6, 4608, %s33_s28, [#allocation3], %s4004_s15, %s4004_s15, %s4005_s16  }
  0x12   :  { %3999 = dma.done.wait [#allocation3], 4608  }
  0x13   :  { %4000 = vsyncadd [#allocation3], 4294962688  ;;  %v4006_v0 = vmov 1   ;;  %v4007_v1 = vmov 0   ;;  %v44_v2 = vld [vmem:[%s4643_s0] sm:$0xff]  ;;  %v45_v3 = vld [vmem:[%s4643_s0 + $0x8] sm:$0xff]  ;;  %v76_v8 = vlaneseq }
  0x14   :  { %3918 = vset.pattern.permute.xlu1 %v4006_v0  ;;  %3917 = vset.pattern.permute.xlu0 %v4007_v1  ;;  %v46_v4 = vld [vmem:[%s4643_s0 + $0x10] sm:$0xff]  ;;  %v47_v5 = vld [vmem:[%s4643_s0 + $0x18] sm:$0xff]  ;;  %v48_v6 = vld [vmem:[%s4643_s0 + $0x20] sm:$0xff]  ;;  %vm145_vm0 = vcmask 326656   ;;  %vm4009_vm1 = vmmov 0   ;;  %vm329_vm2 = vcmask 523264  }
  0x15   :  { %86 = vperm.xlu1 %3918, %v44_v2   ;;  %53 = vperm.xlu0 %3917, %v44_v2   ;;  %v133_v7 = vld [vmem:[%s4647_s4] sm:$0xff]  ;;  %v77_v9 = vshrl.u32 %v76_v8, 7  ;;  %v134_v53 = vld [vmem:[%s4647_s4 + $0x8] sm:$0xff]  ;;  %v135_v54 = vld [vmem:[%s4647_s4 + $0x10] sm:$0xff]  ;;  %vm438_vm3 = vcmask 195584   ;;  %vm648_vm4 = vcmask 261120  }
  0x16   :  { %3211 = vmatprep.mubr.msk.f32.mxu1 %vm145_vm0, %v133_v7  ;;  %v49_v12 = vld [vmem:[%s4644_s1] sm:$0x3]  ;;  %v2776_v22 = vld [vmem:[%s4644_s1 + $0x2] ss:$0 sm:$0xff]  ;;  %v136_v55 = vld [vmem:[%s4647_s4 + $0x18] sm:$0xff] }
  0x17   :  { %v107_v10 = vsub.s32 1, %v77_v9  ;;  %v78_v11 = vsub.s32 0, %v77_v9  ;;  %v137_v56 = vld [vmem:[%s4647_s4 + $0x20] sm:$0xff]  ;;  %v138_v57 = vld [vmem:[%s4647_s4 + $0x28] sm:$0xff]  ;;  %v139_v58 = vld [vmem:[%s4647_s4 + $0x30] sm:$0xff] }
  0x18   :  { %v140_v59 = vld [vmem:[%s4647_s4 + $0x38] sm:$0xff]  ;;  %v141_v60 = vld [vmem:[%s4647_s4 + $0x40] sm:$0xff]  ;;  %v142_v61 = vld [vmem:[%s4647_s4 + $0x48] sm:$0xff] }
  0x19   :  { %90 = vperm.xlu1 %3918, %v45_v3   ;;  %58 = vperm.xlu0 %3917, %v45_v3   ;;  %v108_v13 = vrot.slane %v49_v12, %v107_v10  ;;  %v79_v14 = vrot.slane %v49_v12, %v78_v11  ;;  %v143_v62 = vld [vmem:[%s4647_s4 + $0x50] sm:$0xff]  ;;  %v144_v63 = vld [vmem:[%s4647_s4 + $0x58] sm:$0xff]  ;;  %v4008_v3 = vmov 0.0|0.0   ;;  %v320_v7 = vld [vmem:[%s4644_s1 + $0x28] sm:$0xff] }
  0x1a   :  { %v321_v8 = vld [vmem:[%s4644_s1 + $0x30] sm:$0xff]  ;;  %v322_v10 = vld [vmem:[%s4644_s1 + $0x38] sm:$0xff]  ;;  %v323_v11 = vld [vmem:[%s4644_s1 + $0x40] sm:$0xff] }
  0x1b   :  { %v3643_v9 = vpack.c.bf16 %v321_v8, %v320_v7  ;;  %v3646_v12 = vpack.c.bf16 %v323_v11, %v322_v10  ;;  %v2821_v7 = vld [vmem:[%s4645_s2 + $0x60] sm:$0xff]  ;;  %v2822_v8 = vld [vmem:[%s4645_s2 + $0x68] sm:$0xff]  ;;  %v2823_v10 = vld [vmem:[%s4645_s2 + $0x70] sm:$0xff] }
  0x1c   :  { %v2824_v11 = vld [vmem:[%s4645_s2 + $0x78] sm:$0xff] }
  0x1d   :  { %3919 = vset.pattern.permute.xlu1 %v4007_v1  ;;  %63 = vperm.xlu0 %3917, %v46_v4  }
  0x1e   :  { %68 = vperm.xlu1 %3919, %v47_v5  }
  0x21   :  { %3920 = vset.pattern.permute.xlu0 %v4006_v0 }
  0x22   :  { %3921 = vset.pattern.permute.xlu1 %v4006_v0  ;;  %94 = vperm.xlu0 %3920, %v46_v4   ;;  %v316_v0 = vld [vmem:[%s4644_s1 + $0x8] sm:$0xff]  ;;  %v318_v4 = vld [vmem:[%s4644_s1 + $0x18] sm:$0xff] }
  0x23   :  { %98 = vperm.xlu1 %3921, %v47_v5   ;;  %v319_v5 = vld [vmem:[%s4644_s1 + $0x20] sm:$0xff] }
  0x26   :  { %102 = vperm.xlu0 %3920, %v48_v6  }
  0x27   :  { %3922 = vset.pattern.permute.xlu1 %v4007_v1  ;;  %v317_v1 = vld [vmem:[%s4644_s1 + $0x10] sm:$0xff] }
  0x28   :  { %73 = vperm.xlu1 %3922, %v48_v6   ;;  %v3637_v2 = vpack.c.bf16 %v317_v1, %v316_v0  ;;  %v3640_v6 = vpack.c.bf16 %v319_v5, %v318_v4  ;;  %v437_v0 = vld [vmem:[%s4648_s5 + $0x78] sm:$0xff]  ;;  %v2817_v1 = vld [vmem:[%s4645_s2 + $0x40] sm:$0xff]  ;;  %v2819_v4 = vld [vmem:[%s4645_s2 + $0x50] sm:$0xff] }
  0x29   :  { %v2820_v5 = vld [vmem:[%s4645_s2 + $0x58] sm:$0xff] }
  0x94   :  { %v87_v15 = vpop.permute.xlu1 %86  ;;  %v54_v16 = vpop.permute.xlu0 %53 }
  0x95   :  { %v109_v17 = vmul.f32 %v108_v13, %v87_v15  ;;  %v80_v18 = vmul.f32 %v79_v14, %v54_v16 }
  0x97   :  { %v114_v19 = vadd.f32 %v109_v17, %v80_v18 }
  0x98   :  { %v91_v20 = vpop.permute.xlu1 %90  ;;  %v59_v21 = vpop.permute.xlu0 %58 }
  0x99   :  { %v110_v23 = vmul.f32 %v108_v13, %v91_v20  ;;  %v81_v24 = vmul.f32 %v79_v14, %v59_v21  ;;  %v123_v26 = vadd.f32 %v2776_v22, %v114_v19 }
  0x9b   :  { %v115_v25 = vadd.f32 %v110_v23, %v81_v24  ;;  %v128_v30 = vmax.f32 %v123_v26, 0.0 }
  0x9c   :  { %v64_v27 = vpop.permute.xlu0 %63 }
  0x9d   :  { %v69_v28 = vpop.permute.xlu1 %68  ;;  %v124_v29 = vadd.f32 %v2776_v22, %v115_v25  ;;  %v82_v34 = vmul.f32 %v79_v14, %v64_v27 }
  0x9e   :  { %v83_v37 = vmul.f32 %v79_v14, %v69_v28 }
  0x9f   :  { %v129_v31 = vmax.f32 %v124_v29, 0.0 }
  0xa1   :  { %v95_v32 = vpop.permute.xlu0 %94  ;;  %v3628_v33 = vpack.c.bf16 %v129_v31, %v128_v30 }
  0xa2   :  { %v111_v35 = vmul.f32 %v108_v13, %v95_v32  ;;  %v99_v36 = vpop.permute.xlu1 %98 }
  0xa3   :  { %v112_v38 = vmul.f32 %v108_v13, %v99_v36  ;;  %3629 = vmatprep.subr.bf16.mxu1 %v3628_v33 }
  0xa4   :  { %v116_v39 = vadd.f32 %v111_v35, %v82_v34  ;;  %3631 = vmatpush3.bf16.msra.mxu1 %v3628_v33  ;;  %v422_v35 = vld [vmem:[%s4648_s5] sm:$0xff] }
  0xa5   :  { %v117_v40 = vadd.f32 %v112_v38, %v83_v37  ;;  %v103_v41 = vpop.permute.xlu0 %102  ;;  %v2789_v37 = vld [vmem:[%s4644_s1 + $0x3] ss:$0 sm:$0xff] }
  0xa6   :  { %v125_v42 = vadd.f32 %v2776_v22, %v116_v39  ;;  %v113_v46 = vmul.f32 %v108_v13, %v103_v41  ;;  %v4010_v13 = vmov 0.0  }
  0xa7   :  { %v126_v43 = vadd.f32 %v2776_v22, %v117_v40  ;;  %v74_v44 = vpop.permute.xlu1 %73 }
  0xa8   :  { %v130_v45 = vmax.f32 %v125_v42, 0.0  ;;  %v84_v47 = vmul.f32 %v79_v14, %v74_v44 }
  0xa9   :  { %v131_v48 = vmax.f32 %v126_v43, 0.0 }
  0xaa   :  { %v118_v49 = vadd.f32 %v113_v46, %v84_v47 }
  0xab   :  { %v3632_v50 = vpack.c.bf16 %v131_v48, %v130_v45 }
  0xac   :  { %v127_v51 = vadd.f32 %v2776_v22, %v118_v49 }
  0xad   :  { %3633 = vmatprep.subr.bf16.mxu1 %v3632_v50 }
  0xae   :  { %3635 = vmatpush3.bf16.msra.mxu1 %v3632_v50  ;;  %v132_v52 = vmax.f32 %v127_v51, 0.0  ;;  %v423_v50 = vld [vmem:[%s4648_s5 + $0x8] sm:$0xff]  ;;  %v424_v51 = vld [vmem:[%s4648_s5 + $0x10] sm:$0xff] }
  0xb0   :  { %3209 = vmatprep.subr.mxu1 %v132_v52 }
  0xb2   :  { %3210 = vmatpush3.msra.mxu1 %v132_v52  ;;  %v425_v52 = vld [vmem:[%s4648_s5 + $0x18] sm:$0xff] }
  0xb3   :  { %3212 = vmatmul.mubr.msk.f32.vlgmr.msra.gmra.mrb[0].mxu1 %vm145_vm0, %v134_v53  ;;  %3636 = vmatprep.subr.bf16.mxu1 %v4008_v3  ;;  %v426_v53 = vld [vmem:[%s4648_s5 + $0x20] sm:$0xff] }
  0xb4   :  { %3214 = vmatprep.mubr.msk.f32.mxu1 %vm145_vm0, %v135_v54  ;;  %3638 = vmatpush3.bf16.msra.mxu1 %v3637_v2  ;;  %v427_v54 = vld [vmem:[%s4648_s5 + $0x28] sm:$0xff] }
  0xb5   :  { %3639 = vmatprep.subr.bf16.mxu1 %v4008_v3  ;;  %v2818_v2 = vld [vmem:[%s4645_s2 + $0x48] sm:$0xff] }
  0xb7   :  { %3215 = vmatmul.mubr.msk.f32.gmra.mrb[2].mxu1 %vm145_vm0, %v136_v55  ;;  %v428_v55 = vld [vmem:[%s4648_s5 + $0x30] sm:$0xff] }
  0xb8   :  { %3217 = vmatprep.mubr.msk.f32.mxu1 %vm145_vm0, %v137_v56  ;;  %3641 = vmatpush3.bf16.msra.mxu1 %v3640_v6  ;;  %v429_v56 = vld [vmem:[%s4648_s5 + $0x38] sm:$0xff]  ;;  %v3672_v6 = vpack.c.bf16 %v2820_v5, %v2819_v4 }
  0xb9   :  { %3642 = vmatprep.subr.bf16.mxu1 %v4008_v3 }
  0xbb   :  { %3218 = vmatmul.mubr.msk.f32.gmra.mrb[4].mxu1 %vm145_vm0, %v138_v57  ;;  %v430_v57 = vld [vmem:[%s4648_s5 + $0x40] sm:$0xff] }
  0xbc   :  { %3220 = vmatprep.mubr.msk.f32.mxu1 %vm145_vm0, %v139_v58  ;;  %3644 = vmatpush3.bf16.msra.mxu1 %v3643_v9  ;;  %v431_v58 = vld [vmem:[%s4648_s5 + $0x48] sm:$0xff]  ;;  %v3676_v9 = vpack.c.bf16 %v2822_v8, %v2821_v7  ;;  %v2841_v7 = vld [vmem:[%s4645_s2 + $0xa0] sm:$0xff] }
  0xbd   :  { %3645 = vmatprep.subr.bf16.mxu1 %v4008_v3  ;;  %v3668_v3 = vpack.c.bf16 %v2818_v2, %v2817_v1  ;;  %v2839_v2 = vld [vmem:[%s4645_s2 + $0x90] sm:$0xff]  ;;  %v2842_v8 = vld [vmem:[%s4645_s2 + $0xa8] sm:$0xff] }
  0xbf   :  { %3221 = vmatmul.mubr.msk.f32.gmra.mrb[6].mxu1 %vm145_vm0, %v140_v59  ;;  %v432_v59 = vld [vmem:[%s4648_s5 + $0x50] sm:$0xff] }
  0xc0   :  { %3223 = vmatprep.mubr.msk.f32.mxu1 %vm145_vm0, %v141_v60  ;;  %3647 = vmatpush3.bf16.msra.mxu1 %v3646_v12  ;;  %v433_v60 = vld [vmem:[%s4648_s5 + $0x58] sm:$0xff]  ;;  %v3680_v12 = vpack.c.bf16 %v2824_v11, %v2823_v10  ;;  %v3716_v11 = vpack.c.bf16 %v2842_v8, %v2841_v7 }
  0xc3   :  { %3224 = vmatmul.mubr.msk.f32.gmra.mrb[8].mxu1 %vm145_vm0, %v142_v61  ;;  %v434_v61 = vld [vmem:[%s4648_s5 + $0x60] sm:$0xff] }
  0xc4   :  { %3226 = vmatprep.mubr.msk.f32.mxu1 %vm145_vm0, %v143_v62  ;;  %v435_v62 = vld [vmem:[%s4648_s5 + $0x68] sm:$0xff] }
  0xc7   :  { %3227 = vmatmul.mubr.msk.f32.gmra.mrb[10].mxu1 %vm145_vm0, %v144_v63  ;;  %v436_v63 = vld [vmem:[%s4648_s5 + $0x70] sm:$0xff] }
  0xc8   :  { %3245 = vmatprep.mubr.msk.f32.mxu1 %vm4009_vm1, %v4010_v13 }
 0x186   :  { %v3213_v14 = vpop.f32.mrb[0].mxu1 }
 0x187   :  { %v248_v15 = vpop.f32.mrb[1].mxu1 }
 0x18a   :  { %v3216_v16 = vpop.f32.mrb[2].mxu1 }
 0x18b   :  { %v307_v17 = vmax.f32 %v248_v15, %v3216_v16  ;;  %v258_v18 = vpop.f32.mrb[3].mxu1 }
 0x18e   :  { %v3219_v19 = vpop.f32.mrb[4].mxu1 }
 0x18f   :  { %v309_v20 = vmax.f32 %v258_v18, %v3219_v19  ;;  %v268_v21 = vpop.f32.mrb[5].mxu1 }
 0x190   :  { %v308_v22 = vmax.f32 %v3213_v14, %v268_v21 }
 0x192   :  { %v3222_v23 = vpop.f32.mrb[6].mxu1 }
 0x193   :  { %v278_v24 = vpop.f32.mrb[7].mxu1 }
 0x196   :  { %v3225_v25 = vpop.f32.mrb[8].mxu1 }
 0x197   :  { %v310_v26 = vmax.f32 %v278_v24, %v3225_v25  ;;  %v288_v27 = vpop.f32.mrb[9].mxu1 }
 0x199   :  { %v313_v28 = vmax.f32 %v307_v17, %v310_v26 }
 0x19a   :  { %v3228_v29 = vpop.f32.mrb[10].mxu1 }
 0x19b   :  { %v312_v30 = vmax.f32 %v288_v27, %v3228_v29  ;;  %v298_v31 = vpop.f32.mrb[11].mxu1  ;;  %3246 = vmatmul.mubr.msk.f32.vlgmr.msra.gmra.mrb[12].mxu1 %vm329_vm2, %v313_v28 }
 0x19c   :  { %v311_v32 = vmax.f32 %v3222_v23, %v298_v31  ;;  %3248 = vmatprep.mubr.msk.f32.mxu1 %vm4009_vm1, %v4010_v13 }
 0x19d   :  { %v315_v33 = vmax.f32 %v309_v20, %v312_v30 }
 0x19e   :  { %v314_v34 = vmax.f32 %v308_v22, %v311_v32 }
 0x1a0   :  { %3249 = vmatmul.mubr.msk.f32.gmra.mrb[14].mxu1 %vm329_vm2, %v314_v34 }
 0x1a1   :  { %3251 = vmatprep.mubr.msk.f32.mxu1 %vm4009_vm1, %v4010_v13  ;;  %v644_v13 = vld [vmem:[#allocation2] sm:$0xff] }
 0x1a2   :  { %3292 = vmatprep.mubr.msk.f32.mxu0 %vm648_vm4, %v644_v13 }
 0x1a4   :  { %3252 = vmatmul.mubr.msk.f32.gmra.mrb[16].mxu1 %vm329_vm2, %v315_v33 }
 0x1a5   :  { %3260 = vmatprep.mubr.msk.f32.mxu1 %vm438_vm3, %v422_v35 }
 0x26e   :  { %v405_v36 = vpop.f32.mrb[12].mxu1 }
 0x26f   :  { %v3247_v38 = vpop.f32.mrb[13].mxu1  ;;  %v406_v39 = vadd.f32 %v2789_v37, %v405_v36 }
 0x271   :  { %v419_v43 = vmax.f32 %v406_v39, 0.0 }
 0x273   :  { %v410_v40 = vpop.f32.mrb[14].mxu1 }
 0x274   :  { %v411_v41 = vadd.f32 %v2789_v37, %v410_v40  ;;  %v3250_v42 = vpop.f32.mrb[15].mxu1 }
 0x276   :  { %v420_v44 = vmax.f32 %v411_v41, 0.0 }
 0x277   :  { %v415_v45 = vpop.f32.mrb[16].mxu1 }
 0x278   :  { %v3648_v46 = vpack.c.bf16 %v420_v44, %v419_v43  ;;  %v416_v47 = vadd.f32 %v2789_v37, %v415_v45  ;;  %v3253_v48 = vpop.f32.mrb[17].mxu1  ;;  %v645_v44 = vld [vmem:[#allocation2 + $0x8] sm:$0xff]  ;;  %v646_v45 = vld [vmem:[#allocation2 + $0x10] sm:$0xff] }
 0x279   :  { %v647_v48 = vld [vmem:[#allocation2 + $0x18] sm:$0xff] }
 0x27a   :  { %v421_v49 = vmax.f32 %v416_v47, 0.0  ;;  %3649 = vmatprep.subr.bf16.mxu1 %v3648_v46  ;;  %v747_v47 = vld [vmem:[%s4645_s2 + $0x8] sm:$0xff] }
 0x27b   :  { %3651 = vmatpush3.bf16.msra.mxu1 %v3648_v46  ;;  %v746_v46 = vld [vmem:[%s4645_s2] sm:$0xff] }
 0x27c   :  { %3258 = vmatprep.subr.mxu1 %v421_v49 }
 0x27f   :  { %3259 = vmatpush3.msra.mxu1 %v421_v49  ;;  %v755_v49 = vld [vmem:[#allocation2 + $0x20] sm:$0xff] }
 0x280   :  { %3261 = vmatmul.mubr.msk.f32.vlgmr.msra.gmra.mrb[18].mxu1 %vm438_vm3, %v423_v50  ;;  %3669 = vmatprep.subr.bf16.mxu1 %v3668_v3  ;;  %v3684_v50 = vpack.c.bf16 %v747_v47, %v746_v46  ;;  %v2844_v46 = vld [vmem:[%s4645_s2 + $0xb8] sm:$0xff]  ;;  %v2853_v47 = vld [vmem:[%s4645_s2 + $0xc0] sm:$0xff] }
 0x281   :  { %3263 = vmatprep.mubr.msk.f32.mxu1 %vm438_vm3, %v424_v51  ;;  %3671 = vmatpush3.bf16.msra.mxu1 %v3668_v3  ;;  %v748_v51 = vld [vmem:[%s4645_s2 + $0x10] sm:$0xff]  ;;  %v2840_v3 = vld [vmem:[%s4645_s2 + $0x98] sm:$0xff] }
 0x282   :  { %3673 = vmatprep.subr.bf16.mxu1 %v3672_v6 }
 0x284   :  { %3264 = vmatmul.mubr.msk.f32.gmra.mrb[20].mxu1 %vm438_vm3, %v425_v52  ;;  %v749_v52 = vld [vmem:[%s4645_s2 + $0x18] sm:$0xff] }
 0x285   :  { %3266 = vmatprep.mubr.msk.f32.mxu1 %vm438_vm3, %v426_v53  ;;  %3675 = vmatpush3.bf16.msra.mxu1 %v3672_v6  ;;  %v756_v53 = vld [vmem:[#allocation2 + $0x28] sm:$0xff]  ;;  %v3712_v6 = vpack.c.bf16 %v2840_v3, %v2839_v2 }
 0x286   :  { %3677 = vmatprep.subr.bf16.mxu1 %v3676_v9 }
 0x288   :  { %3267 = vmatmul.mubr.msk.f32.gmra.mrb[22].mxu1 %vm438_vm3, %v427_v54  ;;  %v757_v54 = vld [vmem:[#allocation2 + $0x30] sm:$0xff] }
 0x289   :  { %3269 = vmatprep.mubr.msk.f32.mxu1 %vm438_vm3, %v428_v55  ;;  %3679 = vmatpush3.bf16.msra.mxu1 %v3676_v9  ;;  %v3688_v55 = vpack.c.bf16 %v749_v52, %v748_v51 }
 0x28a   :  { %3681 = vmatprep.subr.bf16.mxu1 %v3680_v12 }
 0x28c   :  { %3270 = vmatmul.mubr.msk.f32.gmra.mrb[24].mxu1 %vm438_vm3, %v429_v56  ;;  %v750_v56 = vld [vmem:[%s4645_s2 + $0x20] sm:$0xff] }
 0x28d   :  { %3272 = vmatprep.mubr.msk.f32.mxu1 %vm438_vm3, %v430_v57  ;;  %3683 = vmatpush3.bf16.msra.mxu1 %v3680_v12  ;;  %v751_v57 = vld [vmem:[%s4645_s2 + $0x28] sm:$0xff] }
 0x290   :  { %3273 = vmatmul.mubr.msk.f32.gmra.mrb[26].mxu1 %vm438_vm3, %v431_v58  ;;  %v758_v58 = vld [vmem:[#allocation2 + $0x38] sm:$0xff] }
 0x291   :  { %3275 = vmatprep.mubr.msk.f32.mxu1 %vm438_vm3, %v432_v59  ;;  %v3692_v59 = vpack.c.bf16 %v751_v57, %v750_v56 }
 0x294   :  { %3276 = vmatmul.mubr.msk.f32.gmra.mrb[28].mxu1 %vm438_vm3, %v433_v60  ;;  %v752_v60 = vld [vmem:[%s4645_s2 + $0x30] sm:$0xff] }
 0x295   :  { %3278 = vmatprep.mubr.msk.f32.mxu1 %vm438_vm3, %v434_v61  ;;  %v753_v61 = vld [vmem:[%s4645_s2 + $0x38] sm:$0xff] }
 0x298   :  { %3279 = vmatmul.mubr.msk.f32.gmra.mrb[30].mxu1 %vm438_vm3, %v435_v62  ;;  %v3696_v62 = vpack.c.bf16 %v753_v61, %v752_v60  ;;  %v2858_v60 = vld [vmem:[%s4645_s2 + $0xe8] sm:$0xff] }
 0x299   :  { %3281 = vmatprep.mubr.msk.f32.mxu1 %vm438_vm3, %v436_v63  ;;  %v2837_v63 = vld [vmem:[%s4645_s2 + $0x80] sm:$0xff] }
 0x29c   :  { %3282 = vmatmul.mubr.msk.f32.gmra.mrb[32].mxu1 %vm438_vm3, %v437_v0  ;;  %v2838_v0 = vld [vmem:[%s4645_s2 + $0x88] sm:$0xff] }
 0x29d   :  { %v3708_v1 = vpack.c.bf16 %v2838_v0, %v2837_v63  ;;  %v2859_v0 = vld [vmem:[%s4645_s2 + $0xf0] sm:$0xff] }
 0x353   :  { %v3262_v14 = vpop.f32.mrb[18].mxu1 }
 0x354   :  { %v553_v15 = vpop.f32.mrb[19].mxu1 }
 0x357   :  { %v3265_v16 = vpop.f32.mrb[20].mxu1 }
 0x358   :  { %v563_v17 = vpop.f32.mrb[21].mxu1 }
 0x35b   :  { %v3268_v18 = vpop.f32.mrb[22].mxu1 }
 0x35c   :  { %v633_v19 = vmax.f32 %v3262_v14, %v3268_v18  ;;  %v573_v20 = vpop.f32.mrb[23].mxu1  ;;  %v1062_v18 = vld [vmem:[#allocation2 + $0x50] sm:$0xff] }
 0x35d   :  { %v632_v21 = vmax.f32 %v553_v15, %v573_v20  ;;  %v1272_v20 = vld [vmem:[#allocation2 + $0x60] sm:$0xff] }
 0x35f   :  { %v3271_v22 = vpop.f32.mrb[24].mxu1 }
 0x360   :  { %v635_v23 = vmax.f32 %v3265_v16, %v3271_v22  ;;  %v583_v24 = vpop.f32.mrb[25].mxu1  ;;  %v1060_v16 = vld [vmem:[#allocation2 + $0x40] sm:$0xff]  ;;  %v1274_v22 = vld [vmem:[#allocation2 + $0x70] sm:$0xff] }
 0x361   :  { %v634_v25 = vmax.f32 %v563_v17, %v583_v24  ;;  %v1061_v17 = vld [vmem:[#allocation2 + $0x48] sm:$0xff]  ;;  %v1484_v24 = vld [vmem:[#allocation2 + $0x80] sm:$0xff] }
 0x363   :  { %v3274_v26 = vpop.f32.mrb[26].mxu1 }
 0x364   :  { %v593_v27 = vpop.f32.mrb[27].mxu1 }
 0x367   :  { %v3277_v28 = vpop.f32.mrb[28].mxu1 }
 0x368   :  { %v603_v29 = vpop.f32.mrb[29].mxu1 }
 0x36b   :  { %v3280_v30 = vpop.f32.mrb[30].mxu1 }
 0x36c   :  { %v637_v31 = vmax.f32 %v3274_v26, %v3280_v30  ;;  %v613_v32 = vpop.f32.mrb[31].mxu1  ;;  %v1486_v26 = vld [vmem:[#allocation2 + $0x90] sm:$0xff] }
 0x36d   :  { %v636_v33 = vmax.f32 %v593_v27, %v613_v32  ;;  %v1487_v27 = vld [vmem:[#allocation2 + $0x98] sm:$0xff]  ;;  %v1698_v30 = vld [vmem:[#allocation2 + $0xb0] sm:$0xff]  ;;  %v1908_v32 = vld [vmem:[#allocation2 + $0xc0] sm:$0xff] }
 0x36e   :  { %v641_v34 = vmax.f32 %v633_v19, %v637_v31  ;;  %v1063_v19 = vld [vmem:[#allocation2 + $0x58] sm:$0xff] }
 0x36f   :  { %v640_v35 = vmax.f32 %v632_v21, %v636_v33  ;;  %v3283_v36 = vpop.f32.mrb[32].mxu1  ;;  %v1273_v21 = vld [vmem:[#allocation2 + $0x68] sm:$0xff]  ;;  %v1699_v31 = vld [vmem:[#allocation2 + $0xb8] sm:$0xff] }
 0x370   :  { %v639_v37 = vmax.f32 %v3277_v28, %v3283_v36  ;;  %v623_v38 = vpop.f32.mrb[33].mxu1  ;;  %v1696_v28 = vld [vmem:[#allocation2 + $0xa0] sm:$0xff]  ;;  %v1909_v33 = vld [vmem:[#allocation2 + $0xc8] sm:$0xff] }
 0x371   :  { %v4263_v39 = vpack.c.bf16 %v641_v34, %v640_v35  ;;  %v638_v40 = vmax.f32 %v603_v29, %v623_v38  ;;  %v1697_v29 = vld [vmem:[#allocation2 + $0xa8] sm:$0xff]  ;;  %v1910_v34 = vld [vmem:[#allocation2 + $0xd0] sm:$0xff]  ;;  %v1911_v35 = vld [vmem:[#allocation2 + $0xd8] sm:$0xff] }
 0x372   :  { %v643_v41 = vmax.f32 %v635_v23, %v639_v37  ;;  %v1275_v23 = vld [vmem:[#allocation2 + $0x78] sm:$0xff]  ;;  %v2120_v36 = vld [vmem:[#allocation2 + $0xe0] sm:$0xff]  ;;  %v2121_v37 = vld [vmem:[#allocation2 + $0xe8] sm:$0xff] }
 0x373   :  { %v642_v42 = vmax.f32 %v634_v25, %v638_v40  ;;  %3653 = vmatprep.subr.bf16.mxu0 %v4263_v39  ;;  %3701 = vmatprep.subr.bf16.mxu1 %v4263_v39  ;;  %v1485_v25 = vld [vmem:[#allocation2 + $0x88] sm:$0xff]  ;;  %v2122_v38 = vld [vmem:[#allocation2 + $0xf0] sm:$0xff]  ;;  %v2123_v40 = vld [vmem:[#allocation2 + $0xf8] sm:$0xff] }
 0x374   :  { %3655 = vmatpush3.bf16.msra.mxu0 %v4263_v39 }
 0x375   :  { %v4268_v43 = vpack.c.bf16 %v643_v41, %v642_v42  ;;  %v2332_v41 = vld [vmem:[#allocation2 + $0x100] sm:$0xff]  ;;  %v2333_v42 = vld [vmem:[#allocation2 + $0x108] sm:$0xff] }
 0x377   :  { %3657 = vmatprep.subr.bf16.mxu0 %v4268_v43 }
 0x378   :  { %3659 = vmatpush3.bf16.msra.mxu0 %v4268_v43 }
 0x379   :  { %3661 = vmatprep.subr.bf16.mxu0 %v4263_v39 }
 0x37b   :  { %3293 = vmatmul.mubr.msk.f32.vlgmr.msra.gmra.mrb[0].mxu0 %vm648_vm4, %v645_v44  ;;  %v2334_v44 = vld [vmem:[#allocation2 + $0x110] sm:$0xff] }
 0x37c   :  { %3663 = vmatpush3.bf16.msra.mxu0 %v4263_v39  ;;  %3295 = vmatprep.mubr.msk.f32.mxu0 %vm648_vm4, %v646_v45  ;;  %v2335_v45 = vld [vmem:[#allocation2 + $0x118] sm:$0xff] }
 0x37d   :  { %3665 = vmatprep.subr.bf16.mxu0 %v4268_v43 }
 0x37f   :  { %3296 = vmatmul.mubr.msk.f32.gmra.mrb[2].mxu0 %vm648_vm4, %v647_v48  ;;  %v2854_v48 = vld [vmem:[%s4645_s2 + $0xc8] sm:$0xff] }
 0x380   :  { %3667 = vmatpush3.bf16.msra.mxu0 %v4268_v43  ;;  %3306 = vmatprep.mubr.msk.f32.mxu0 %vm648_vm4, %v755_v49  ;;  %v3732_v49 = vpack.c.bf16 %v2854_v48, %v2853_v47 }
 0x381   :  { %3685 = vmatprep.subr.bf16.mxu0 %v3684_v50 }
 0x383   :  { %3307 = vmatmul.mubr.msk.f32.vlgmr.msra.gmra.mrb[4].mxu0 %vm648_vm4, %v756_v53 }
 0x384   :  { %3309 = vmatprep.mubr.msk.f32.mxu0 %vm648_vm4, %v757_v54  ;;  %3687 = vmatpush3.bf16.msra.mxu0 %v3684_v50  ;;  %v2855_v54 = vld [vmem:[%s4645_s2 + $0xd0] sm:$0xff] }
 0x385   :  { %3689 = vmatprep.subr.bf16.mxu0 %v3688_v55 }
 0x387   :  { %3310 = vmatmul.mubr.msk.f32.gmra.mrb[6].mxu0 %vm648_vm4, %v758_v58 }
 0x388   :  { %3691 = vmatpush3.bf16.msra.mxu0 %v3688_v55  ;;  %v2856_v55 = vld [vmem:[%s4645_s2 + $0xd8] sm:$0xff] }
 0x389   :  { %3693 = vmatprep.subr.bf16.mxu0 %v3692_v59  ;;  %v3736_v58 = vpack.c.bf16 %v2856_v55, %v2855_v54  ;;  %v2903_v54 = vld [vmem:[%s4645_s2 + $0x190] sm:$0xff]  ;;  %v2904_v55 = vld [vmem:[%s4645_s2 + $0x198] sm:$0xff] }
 0x38c   :  { %3695 = vmatpush3.bf16.msra.mxu0 %v3692_v59  ;;  %v2857_v59 = vld [vmem:[%s4645_s2 + $0xe0] sm:$0xff] }
 0x38d   :  { %3697 = vmatprep.subr.bf16.mxu0 %v3696_v62 }
 0x390   :  { %3699 = vmatpush3.bf16.msra.mxu0 %v3696_v62  ;;  %v3740_v62 = vpack.c.bf16 %v2858_v60, %v2857_v59  ;;  %v2905_v59 = vld [vmem:[%s4645_s2 + $0x1a0] sm:$0xff]  ;;  %v2906_v60 = vld [vmem:[%s4645_s2 + $0x1a8] sm:$0xff] }
 0x391   :  { %3709 = vmatprep.subr.bf16.mxu0 %v3708_v1 }
 0x44e   :  { %v3294_v4 = vpop.f32.mrb[0].mxu0 }
 0x44f   :  { %v727_v5 = vpop.f32.mrb[1].mxu0 }
 0x450   :  { %3350 = vmatprep.mubr.msk.f32.mxu0 %vm329_vm2, %v727_v5  ;;  %v2869_v5 = vld [vmem:[%s4645_s2 + $0x100] sm:$0xff] }
 0x451   :  { %3351 = vmatmul.mubr.msk.f32.vlgmr.msra.gmra.mrb[8].mxu0 %vm329_vm2, %v3294_v4 }
 0x452   :  { %v3297_v9 = vpop.f32.mrb[2].mxu0  ;;  %3711 = vmatpush3.bf16.msra.mxu0 %v3708_v1  ;;  %v2860_v1 = vld [vmem:[%s4645_s2 + $0xf8] sm:$0xff] }
 0x453   :  { %v737_v10 = vpop.f32.mrb[3].mxu0  ;;  %3713 = vmatprep.subr.bf16.mxu0 %v3712_v6  ;;  %v3744_v3 = vpack.c.bf16 %v2860_v1, %v2859_v0  ;;  %v2907_v0 = vld [vmem:[%s4645_s2 + $0x1b0] sm:$0xff]  ;;  %v2908_v1 = vld [vmem:[%s4645_s2 + $0x1b8] sm:$0xff] }
 0x454   :  { %3353 = vmatprep.mubr.msk.f32.mxu0 %vm329_vm2, %v737_v10  ;;  %v2871_v10 = vld [vmem:[%s4645_s2 + $0x110] sm:$0xff] }
 0x455   :  { %3354 = vmatmul.mubr.msk.f32.gmra.mrb[10].mxu0 %vm329_vm2, %v3297_v9 }
 0x456   :  { %v3308_v12 = vpop.f32.mrb[4].mxu0  ;;  %3715 = vmatpush3.bf16.msra.mxu0 %v3712_v6  ;;  %v2870_v6 = vld [vmem:[%s4645_s2 + $0x108] sm:$0xff] }
 0x457   :  { %v837_v13 = vpop.f32.mrb[5].mxu0  ;;  %3717 = vmatprep.subr.bf16.mxu0 %v3716_v11  ;;  %v3756_v8 = vpack.c.bf16 %v2870_v6, %v2869_v5  ;;  %v2919_v6 = vld [vmem:[%s4645_s2 + $0x1d0] sm:$0xff] }
 0x458   :  { %3328 = vmatprep.mubr.msk.f32.mxu1 %vm329_vm2, %v837_v13 }
 0x459   :  { %3329 = vmatmul.mubr.msk.f32.vlgmr.msra.gmra.mrb[34].mxu1 %vm329_vm2, %v3308_v12 }
 0x45a   :  { %3703 = vmatpush3.bf16.msra.mxu1 %v4263_v39  ;;  %v3311_v14 = vpop.f32.mrb[6].mxu0  ;;  %3719 = vmatpush3.bf16.msra.mxu0 %v3716_v11  ;;  %v2872_v11 = vld [vmem:[%s4645_s2 + $0x118] sm:$0xff] }
 0x45b   :  { %3705 = vmatprep.subr.bf16.mxu1 %v4268_v43  ;;  %v847_v15 = vpop.f32.mrb[7].mxu0  ;;  %v3760_v13 = vpack.c.bf16 %v2872_v11, %v2871_v10  ;;  %v2922_v10 = vld [vmem:[%s4645_s2 + $0x1e8] sm:$0xff] }
 0x45c   :  { %3331 = vmatprep.mubr.msk.f32.mxu1 %vm329_vm2, %v847_v15  ;;  %v2873_v15 = vld [vmem:[%s4645_s2 + $0x120] sm:$0xff] }
 0x45d   :  { %3332 = vmatmul.mubr.msk.f32.gmra.mrb[36].mxu1 %vm329_vm2, %v3311_v14 }
 0x45e   :  { %3707 = vmatpush3.bf16.msra.mxu1 %v4268_v43  ;;  %3364 = vmatprep.mubr.msk.f32.mxu1 %vm648_vm4, %v1060_v16  ;;  %v2874_v16 = vld [vmem:[%s4645_s2 + $0x128] sm:$0xff] }
 0x45f   :  { %3725 = vmatprep.subr.bf16.mxu1 %v4263_v39 }
 0x461   :  { %3365 = vmatmul.mubr.msk.f32.vlgmr.msra.gmra.mrb[38].mxu1 %vm648_vm4, %v1061_v17 }
 0x462   :  { %3727 = vmatpush3.bf16.msra.mxu1 %v4263_v39  ;;  %3367 = vmatprep.mubr.msk.f32.mxu1 %vm648_vm4, %v1062_v18  ;;  %v3764_v18 = vpack.c.bf16 %v2874_v16, %v2873_v15  ;;  %v2933_v15 = vld [vmem:[%s4645_s2 + $0x200] sm:$0xff]  ;;  %v2934_v16 = vld [vmem:[%s4645_s2 + $0x208] sm:$0xff] }
 0x463   :  { %3729 = vmatprep.subr.bf16.mxu1 %v4268_v43 }
 0x465   :  { %3368 = vmatmul.mubr.msk.f32.gmra.mrb[40].mxu1 %vm648_vm4, %v1063_v19 }
 0x466   :  { %3731 = vmatpush3.bf16.msra.mxu1 %v4268_v43  ;;  %3400 = vmatprep.mubr.msk.f32.mxu1 %vm648_vm4, %v1272_v20  ;;  %v2875_v20 = vld [vmem:[%s4645_s2 + $0x130] sm:$0xff] }
 0x467   :  { %3749 = vmatprep.subr.bf16.mxu1 %v4263_v39 }
 0x469   :  { %3401 = vmatmul.mubr.msk.f32.vlgmr.msra.gmra.mrb[42].mxu1 %vm648_vm4, %v1273_v21  ;;  %v2876_v21 = vld [vmem:[%s4645_s2 + $0x138] sm:$0xff] }
 0x46a   :  { %3751 = vmatpush3.bf16.msra.mxu1 %v4263_v39  ;;  %3403 = vmatprep.mubr.msk.f32.mxu1 %vm648_vm4, %v1274_v22 }
 0x46b   :  { %3753 = vmatprep.subr.bf16.mxu1 %v4268_v43 }
 0x46d   :  { %3404 = vmatmul.mubr.msk.f32.gmra.mrb[44].mxu1 %vm648_vm4, %v1275_v23  ;;  %v3768_v23 = vpack.c.bf16 %v2876_v21, %v2875_v20  ;;  %v2937_v21 = vld [vmem:[%s4645_s2 + $0x220] sm:$0xff] }
 0x46e   :  { %3755 = vmatpush3.bf16.msra.mxu1 %v4268_v43  ;;  %3436 = vmatprep.mubr.msk.f32.mxu1 %vm648_vm4, %v1484_v24 }
 0x46f   :  { %3773 = vmatprep.subr.bf16.mxu1 %v4263_v39 }
 0x471   :  { %3437 = vmatmul.mubr.msk.f32.vlgmr.msra.gmra.mrb[46].mxu1 %vm648_vm4, %v1485_v25  ;;  %v2885_v25 = vld [vmem:[%s4645_s2 + $0x140] sm:$0xff] }
 0x472   :  { %3775 = vmatpush3.bf16.msra.mxu1 %v4263_v39  ;;  %3439 = vmatprep.mubr.msk.f32.mxu1 %vm648_vm4, %v1486_v26  ;;  %v2886_v26 = vld [vmem:[%s4645_s2 + $0x148] sm:$0xff] }
 0x473   :  { %3777 = vmatprep.subr.bf16.mxu1 %v4268_v43 }
 0x475   :  { %3440 = vmatmul.mubr.msk.f32.gmra.mrb[48].mxu1 %vm648_vm4, %v1487_v27 }
 0x476   :  { %3779 = vmatpush3.bf16.msra.mxu1 %v4268_v43  ;;  %3472 = vmatprep.mubr.msk.f32.mxu1 %vm648_vm4, %v1696_v28  ;;  %v3780_v28 = vpack.c.bf16 %v2886_v26, %v2885_v25  ;;  %v2940_v25 = vld [vmem:[%s4645_s2 + $0x238] sm:$0xff] }
 0x477   :  { %3797 = vmatprep.subr.bf16.mxu1 %v4263_v39 }
 0x479   :  { %3473 = vmatmul.mubr.msk.f32.vlgmr.msra.gmra.mrb[50].mxu1 %vm648_vm4, %v1697_v29 }
 0x47a   :  { %3799 = vmatpush3.bf16.msra.mxu1 %v4263_v39  ;;  %3475 = vmatprep.mubr.msk.f32.mxu1 %vm648_vm4, %v1698_v30  ;;  %v2887_v30 = vld [vmem:[%s4645_s2 + $0x150] sm:$0xff] }
 0x47b   :  { %3801 = vmatprep.subr.bf16.mxu1 %v4268_v43 }
 0x47d   :  { %3476 = vmatmul.mubr.msk.f32.gmra.mrb[52].mxu1 %vm648_vm4, %v1699_v31  ;;  %v2888_v31 = vld [vmem:[%s4645_s2 + $0x158] sm:$0xff] }
 0x47e   :  { %3803 = vmatpush3.bf16.msra.mxu1 %v4268_v43  ;;  %3508 = vmatprep.mubr.msk.f32.mxu1 %vm648_vm4, %v1908_v32 }
 0x47f   :  { %3821 = vmatprep.subr.bf16.mxu1 %v4263_v39 }
 0x481   :  { %3509 = vmatmul.mubr.msk.f32.vlgmr.msra.gmra.mrb[54].mxu1 %vm648_vm4, %v1909_v33  ;;  %v3784_v33 = vpack.c.bf16 %v2888_v31, %v2887_v30 }
 0x482   :  { %3823 = vmatpush3.bf16.msra.mxu1 %v4263_v39  ;;  %3511 = vmatprep.mubr.msk.f32.mxu1 %vm648_vm4, %v1910_v34 }
 0x483   :  { %3825 = vmatprep.subr.bf16.mxu1 %v4268_v43 }
 0x485   :  { %3512 = vmatmul.mubr.msk.f32.gmra.mrb[56].mxu1 %vm648_vm4, %v1911_v35  ;;  %v2889_v35 = vld [vmem:[%s4645_s2 + $0x160] sm:$0xff] }
 0x486   :  { %3827 = vmatpush3.bf16.msra.mxu1 %v4268_v43  ;;  %3544 = vmatprep.mubr.msk.f32.mxu1 %vm648_vm4, %v2120_v36  ;;  %v2890_v36 = vld [vmem:[%s4645_s2 + $0x168] sm:$0xff] }
 0x487   :  { %3845 = vmatprep.subr.bf16.mxu1 %v4263_v39 }
 0x489   :  { %3545 = vmatmul.mubr.msk.f32.vlgmr.msra.gmra.mrb[58].mxu1 %vm648_vm4, %v2121_v37 }
 0x48a   :  { %3847 = vmatpush3.bf16.msra.mxu1 %v4263_v39  ;;  %3547 = vmatprep.mubr.msk.f32.mxu1 %vm648_vm4, %v2122_v38  ;;  %v2843_v39 = vld [vmem:[%s4645_s2 + $0xb0] sm:$0xff]  ;;  %v3788_v38 = vpack.c.bf16 %v2890_v36, %v2889_v35 }
 0x48b   :  { %3849 = vmatprep.subr.bf16.mxu1 %v4268_v43 }
 0x48d   :  { %3548 = vmatmul.mubr.msk.f32.gmra.mrb[60].mxu1 %vm648_vm4, %v2123_v40 }
 0x48e   :  { %3851 = vmatpush3.bf16.msra.mxu1 %v4268_v43  ;;  %3580 = vmatprep.mubr.msk.f32.mxu1 %vm648_vm4, %v2332_v41  ;;  %v3720_v43 = vpack.c.bf16 %v2844_v46, %v2843_v39  ;;  %v2891_v41 = vld [vmem:[%s4645_s2 + $0x170] sm:$0xff]  ;;  %v2901_v46 = vld [vmem:[%s4645_s2 + $0x180] sm:$0xff] }
 0x490   :  { %3721 = vmatprep.subr.bf16.mxu0 %v3720_v43 }
 0x491   :  { %3581 = vmatmul.mubr.msk.f32.vlgmr.msra.gmra.mrb[62].mxu1 %vm648_vm4, %v2333_v42  ;;  %3723 = vmatpush3.bf16.msra.mxu0 %v3720_v43  ;;  %v2892_v42 = vld [vmem:[%s4645_s2 + $0x178] sm:$0xff]  ;;  %v2902_v43 = vld [vmem:[%s4645_s2 + $0x188] sm:$0xff] }
 0x492   :  { %3583 = vmatprep.mubr.msk.f32.mxu1 %vm648_vm4, %v2334_v44  ;;  %3733 = vmatprep.subr.bf16.mxu0 %v3732_v49  ;;  %v3804_v48 = vpack.c.bf16 %v2902_v43, %v2901_v46  ;;  %v2562_v43 = vld [vmem:[%s4650_s7 + $0x20] sm:$0xff] }
 0x495   :  { %3584 = vmatmul.mubr.msk.f32.gmra.mrb[64].mxu1 %vm648_vm4, %v2335_v45  ;;  %v3792_v45 = vpack.c.bf16 %v2892_v42, %v2891_v41 }
 0x52c   :  { %v4400_v50 = vpop.f32.mrb[34].mxu1 }
 0x52d   :  { %v4402_v51 = vpop.f32.mrb[35].mxu1 }
 0x530   :  { %v4404_v52 = vpop.f32.mrb[36].mxu1 }
 0x531   :  { %v4406_v53 = vpop.f32.mrb[37].mxu1 }
 0x534   :  { %v3366_v56 = vpop.f32.mrb[38].mxu1 }
 0x535   :  { %v1142_v57 = vpop.f32.mrb[39].mxu1 }
 0x536   :  { %3386 = vmatprep.mubr.msk.f32.mxu0 %vm329_vm2, %v1142_v57  ;;  %v3808_v57 = vpack.c.bf16 %v2904_v55, %v2903_v54 }
 0x537   :  { %3387 = vmatmul.mubr.msk.f32.vlgmr.msra.gmra.mrb[8].mxu0 %vm329_vm2, %v3366_v56 }
 0x538   :  { %3735 = vmatpush3.bf16.msra.mxu0 %v3732_v49  ;;  %v3369_v61 = vpop.f32.mrb[40].mxu1 }
 0x539   :  { %3737 = vmatprep.subr.bf16.mxu0 %v3736_v58  ;;  %v1152_v63 = vpop.f32.mrb[41].mxu1 }
 0x53a   :  { %3389 = vmatprep.mubr.msk.f32.mxu0 %vm329_vm2, %v1152_v63 }
 0x53b   :  { %3390 = vmatmul.mubr.msk.f32.gmra.mrb[10].mxu0 %vm329_vm2, %v3369_v61 }
 0x53c   :  { %3739 = vmatpush3.bf16.msra.mxu0 %v3736_v58  ;;  %v3402_v2 = vpop.f32.mrb[42].mxu1 }
 0x53d   :  { %3741 = vmatprep.subr.bf16.mxu0 %v3740_v62  ;;  %v1354_v4 = vpop.f32.mrb[43].mxu1 }
 0x53e   :  { %3422 = vmatprep.mubr.msk.f32.mxu0 %vm329_vm2, %v1354_v4  ;;  %v2918_v4 = vld [vmem:[%s4645_s2 + $0x1c8] sm:$0xff] }
 0x540   :  { %3743 = vmatpush3.bf16.msra.mxu0 %v3740_v62  ;;  %v3405_v7 = vpop.f32.mrb[44].mxu1  ;;  %v3812_v62 = vpack.c.bf16 %v2906_v60, %v2905_v59 }
 0x541   :  { %3745 = vmatprep.subr.bf16.mxu0 %v3744_v3  ;;  %v1364_v9 = vpop.f32.mrb[45].mxu1 }
 0x544   :  { %3747 = vmatpush3.bf16.msra.mxu0 %v3744_v3  ;;  %v3438_v12 = vpop.f32.mrb[46].mxu1  ;;  %v2917_v3 = vld [vmem:[%s4645_s2 + $0x1c0] sm:$0xff] }
 0x545   :  { %3757 = vmatprep.subr.bf16.mxu0 %v3756_v8  ;;  %v1566_v14 = vpop.f32.mrb[47].mxu1  ;;  %v3828_v5 = vpack.c.bf16 %v2918_v4, %v2917_v3 }
 0x547   :  { %3423 = vmatmul.mubr.msk.f32.vlgmr.msra.gmra.mrb[8].mxu0 %vm329_vm2, %v3402_v2  ;;  %v3816_v2 = vpack.c.bf16 %v2908_v1, %v2907_v0 }
 0x548   :  { %3759 = vmatpush3.bf16.msra.mxu0 %v3756_v8  ;;  %3425 = vmatprep.mubr.msk.f32.mxu0 %vm329_vm2, %v1364_v9  ;;  %v3441_v17 = vpop.f32.mrb[48].mxu1  ;;  %v2921_v9 = vld [vmem:[%s4645_s2 + $0x1e0] sm:$0xff] }
 0x549   :  { %3761 = vmatprep.subr.bf16.mxu0 %v3760_v13  ;;  %v1576_v19 = vpop.f32.mrb[49].mxu1  ;;  %v3836_v11 = vpack.c.bf16 %v2922_v10, %v2921_v9 }
 0x54b   :  { %3426 = vmatmul.mubr.msk.f32.gmra.mrb[10].mxu0 %vm329_vm2, %v3405_v7  ;;  %v2920_v7 = vld [vmem:[%s4645_s2 + $0x1d8] sm:$0xff] }
 0x54c   :  { %3763 = vmatpush3.bf16.msra.mxu0 %v3760_v13  ;;  %3458 = vmatprep.mubr.msk.f32.mxu0 %vm329_vm2, %v1566_v14  ;;  %v3474_v22 = vpop.f32.mrb[50].mxu1  ;;  %v3832_v8 = vpack.c.bf16 %v2920_v7, %v2919_v6  ;;  %v2924_v13 = vld [vmem:[%s4645_s2 + $0x1f8] sm:$0xff] }
 0x54d   :  { %3765 = vmatprep.subr.bf16.mxu0 %v3764_v18  ;;  %v1778_v24 = vpop.f32.mrb[51].mxu1 }
 0x550   :  { %3767 = vmatpush3.bf16.msra.mxu0 %v3764_v18  ;;  %v3477_v27 = vpop.f32.mrb[52].mxu1  ;;  %v2935_v18 = vld [vmem:[%s4645_s2 + $0x210] sm:$0xff] }
 0x551   :  { %3769 = vmatprep.subr.bf16.mxu0 %v3768_v23  ;;  %v1788_v29 = vpop.f32.mrb[53].mxu1 }
 0x554   :  { %3771 = vmatpush3.bf16.msra.mxu0 %v3768_v23  ;;  %v4471_v32 = vpop.f32.mrb[54].mxu1 }
 0x555   :  { %3781 = vmatprep.subr.bf16.mxu0 %v3780_v28  ;;  %v1990_v34 = vpop.f32.mrb[55].mxu1 }
 0x557   :  { %3459 = vmatmul.mubr.msk.f32.vlgmr.msra.gmra.mrb[8].mxu0 %vm329_vm2, %v3438_v12  ;;  %v2923_v12 = vld [vmem:[%s4645_s2 + $0x1f0] sm:$0xff] }
 0x558   :  { %3783 = vmatpush3.bf16.msra.mxu0 %v3780_v28  ;;  %3461 = vmatprep.mubr.msk.f32.mxu0 %vm329_vm2, %v1576_v19  ;;  %v3513_v37 = vpop.f32.mrb[56].mxu1  ;;  %v3840_v14 = vpack.c.bf16 %v2924_v13, %v2923_v12  ;;  %v2936_v19 = vld [vmem:[%s4645_s2 + $0x218] sm:$0xff] }
 0x559   :  { %3785 = vmatprep.subr.bf16.mxu0 %v3784_v33  ;;  %v2000_v40 = vpop.f32.mrb[57].mxu1  ;;  %v3856_v20 = vpack.c.bf16 %v2936_v19, %v2935_v18 }
 0x55b   :  { %3462 = vmatmul.mubr.msk.f32.gmra.mrb[10].mxu0 %vm329_vm2, %v3441_v17  ;;  %v3852_v17 = vpack.c.bf16 %v2934_v16, %v2933_v15 }
 0x55c   :  { %3787 = vmatpush3.bf16.msra.mxu0 %v3784_v33  ;;  %3494 = vmatprep.mubr.msk.f32.mxu0 %vm329_vm2, %v1778_v24  ;;  %v4489_v44 = vpop.f32.mrb[58].mxu1  ;;  %v2939_v24 = vld [vmem:[%s4645_s2 + $0x230] sm:$0xff] }
 0x55d   :  { %3789 = vmatprep.subr.bf16.mxu0 %v3788_v38  ;;  %v2202_v39 = vpop.f32.mrb[59].mxu1  ;;  %v3864_v26 = vpack.c.bf16 %v2940_v25, %v2939_v24 }
 0x560   :  { %3791 = vmatpush3.bf16.msra.mxu0 %v3788_v38  ;;  %v4497_v47 = vpop.f32.mrb[60].mxu1 }
 0x561   :  { %3793 = vmatprep.subr.bf16.mxu0 %v3792_v45  ;;  %v2212_v49 = vpop.f32.mrb[61].mxu1 }
 0x564   :  { %3795 = vmatpush3.bf16.msra.mxu0 %v3792_v45  ;;  %v4505_v56 = vpop.f32.mrb[62].mxu1 }
 0x565   :  { %3805 = vmatprep.subr.bf16.mxu0 %v3804_v48  ;;  %v2414_v58 = vpop.f32.mrb[63].mxu1 }
 0x567   :  { %3495 = vmatmul.mubr.msk.f32.vlgmr.msra.gmra.mrb[8].mxu0 %vm329_vm2, %v3474_v22  ;;  %v2938_v22 = vld [vmem:[%s4645_s2 + $0x228] sm:$0xff] }
 0x568   :  { %3807 = vmatpush3.bf16.msra.mxu0 %v3804_v48  ;;  %3497 = vmatprep.mubr.msk.f32.mxu0 %vm329_vm2, %v1788_v29  ;;  %v4515_v61 = vpop.f32.mrb[64].mxu1  ;;  %v3860_v23 = vpack.c.bf16 %v2938_v22, %v2937_v21  ;;  %v2945_v29 = vld [vmem:[%s4646_s3] ss:$0 sm:$0xff]  ;;  %v2564_v48 = vld [vmem:[%s4650_s7 + $0x30] sm:$0xff] }
 0x569   :  { %3809 = vmatprep.subr.bf16.mxu0 %v3808_v57  ;;  %v2424_v63 = vpop.f32.mrb[65].mxu1 }
 0x56b   :  { %3498 = vmatmul.mubr.msk.f32.gmra.mrb[10].mxu0 %vm329_vm2, %v3477_v27  ;;  %v2558_v27 = vld [vmem:[%s4650_s7] sm:$0xff] }
 0x56c   :  { %3811 = vmatpush3.bf16.msra.mxu0 %v3808_v57  ;;  %3530 = vmatprep.mubr.msk.f32.mxu0 %vm329_vm2, %v1990_v34 }
 0x56d   :  { %3813 = vmatprep.subr.bf16.mxu0 %v3812_v62  ;;  %3616 = vmatprep.mubr.msk.f32.mxu1 %vm648_vm4, %v2558_v27 }
 0x570   :  { %3815 = vmatpush3.bf16.msra.mxu0 %v3812_v62 }
 0x571   :  { %3817 = vmatprep.subr.bf16.mxu0 %v3816_v2 }
 0x574   :  { %3819 = vmatpush3.bf16.msra.mxu0 %v3816_v2 }
 0x575   :  { %3829 = vmatprep.subr.bf16.mxu0 %v3828_v5 }
 0x577   :  { %3531 = vmatmul.mubr.msk.f32.vlgmr.msra.gmra.mrb[8].mxu0 %vm329_vm2, %v4471_v32 }
 0x578   :  { %3831 = vmatpush3.bf16.msra.mxu0 %v3828_v5  ;;  %3533 = vmatprep.mubr.msk.f32.mxu0 %vm329_vm2, %v2000_v40 }
 0x579   :  { %3833 = vmatprep.subr.bf16.mxu0 %v3832_v8 }
 0x57b   :  { %3534 = vmatmul.mubr.msk.f32.gmra.mrb[10].mxu0 %vm329_vm2, %v3513_v37 }
 0x57c   :  { %3835 = vmatpush3.bf16.msra.mxu0 %v3832_v8  ;;  %3566 = vmatprep.mubr.msk.f32.mxu0 %vm329_vm2, %v2202_v39 }
 0x57d   :  { %3837 = vmatprep.subr.bf16.mxu0 %v3836_v11 }
 0x580   :  { %3839 = vmatpush3.bf16.msra.mxu0 %v3836_v11 }
 0x581   :  { %3841 = vmatprep.subr.bf16.mxu0 %v3840_v14 }
 0x584   :  { %3843 = vmatpush3.bf16.msra.mxu0 %v3840_v14 }
 0x585   :  { %3853 = vmatprep.subr.bf16.mxu0 %v3852_v17 }
 0x587   :  { %3567 = vmatmul.mubr.msk.f32.vlgmr.msra.gmra.mrb[8].mxu0 %vm329_vm2, %v4489_v44 }
 0x588   :  { %3855 = vmatpush3.bf16.msra.mxu0 %v3852_v17  ;;  %3569 = vmatprep.mubr.msk.f32.mxu0 %vm329_vm2, %v2212_v49  ;;  %v2565_v49 = vld [vmem:[%s4650_s7 + $0x38] sm:$0xff] }
 0x589   :  { %3857 = vmatprep.subr.bf16.mxu0 %v3856_v20 }
 0x58b   :  { %3570 = vmatmul.mubr.msk.f32.gmra.mrb[10].mxu0 %vm329_vm2, %v4497_v47  ;;  %v2563_v47 = vld [vmem:[%s4650_s7 + $0x28] sm:$0xff] }
 0x58c   :  { %3859 = vmatpush3.bf16.msra.mxu0 %v3856_v20  ;;  %3602 = vmatprep.mubr.msk.f32.mxu0 %vm329_vm2, %v2414_v58 }
 0x58d   :  { %3861 = vmatprep.subr.bf16.mxu0 %v3860_v23 }
 0x590   :  { %3863 = vmatpush3.bf16.msra.mxu0 %v3860_v23 }
 0x591   :  { %3865 = vmatprep.subr.bf16.mxu0 %v3864_v26 }
 0x594   :  { %3867 = vmatpush3.bf16.msra.mxu0 %v3864_v26 }
 0x597   :  { %3603 = vmatmul.mubr.msk.f32.vlgmr.msra.gmra.mrb[8].mxu0 %vm329_vm2, %v4505_v56 }
 0x598   :  { %3605 = vmatprep.mubr.msk.f32.mxu0 %vm329_vm2, %v2424_v63 }
 0x59b   :  { %3606 = vmatmul.mubr.msk.f32.gmra.mrb[10].mxu0 %vm329_vm2, %v4515_v61 }
 0x66a   :  { %v3604_v28 = vpop.f32.mrb[8].mxu0 }
 0x66b   :  { %v3876_v30 = vadd.f32 %v3604_v28, %v4400_v50  ;;  %v2520_v31 = vpop.f32.mrb[9].mxu0 }
 0x66c   :  { %v3877_v32 = vadd.f32 %v2520_v31, %v4402_v51  ;;  %v2559_v51 = vld [vmem:[%s4650_s7 + $0x8] sm:$0xff] }
 0x66d   :  { %v2551_v33 = vadd.f32 %v3876_v30, %v2945_v29 }
 0x66e   :  { %v2550_v34 = vadd.f32 %v3877_v32, %v2945_v29  ;;  %v3607_v35 = vpop.f32.mrb[10].mxu0 }
 0x66f   :  { %v2555_v36 = vmax.f32 %v2551_v33, 0.0  ;;  %v3878_v37 = vadd.f32 %v3607_v35, %v4404_v52  ;;  %v2530_v38 = vpop.f32.mrb[11].mxu0  ;;  %v2560_v52 = vld [vmem:[%s4650_s7 + $0x10] sm:$0xff] }
 0x670   :  { %v2554_v40 = vmax.f32 %v2550_v34, 0.0  ;;  %v3879_v41 = vadd.f32 %v2530_v38, %v4406_v53  ;;  %v2561_v53 = vld [vmem:[%s4650_s7 + $0x18] sm:$0xff]  ;;  %s4011_s7 = smov [#allocation5]  }
 0x671   :  { %v2553_v42 = vadd.f32 %v3878_v37, %v2945_v29  ;;  %s2764_s23 = sshll.u32 %s4011_s7, 4  ;;  %s2765_s23 = int_to_ptr.vmem [resolvable:$true] %s2764_s23 }
 0x672   :  { %v2552_v44 = vadd.f32 %v3879_v41, %v2945_v29  ;;  %v3868_v45 = vpack.c.bf16 %v2555_v36, %v2554_v40  ;;  %s3977_s6 = scalar_lea.vmem %s2765_s23, 1024  ;;  %p3982_p9 = scmp.lt.s32.totalorder %s2765_s23, %s2765_s23 }
 0x673   :  { %v2557_v39 = vmax.f32 %v2553_v42, 0.0  ;;  %p3978_p8 = scmp.ne.s32.totalorder %s2765_s23, %s3977_s6  ;;  %p3983_p10 = scmp.lt.s32.totalorder %s3977_s6, %s3977_s6 }
 0x674   :  { %v2556_v46 = vmax.f32 %v2552_v44, 0.0  ;;  %3869 = vmatprep.subr.bf16.mxu1 %v3868_v45 }
 0x675   :  { %3871 = vmatpush3.bf16.msra.mxu1 %v3868_v45  ;;  %p3984_p11 = por %p3983_p10, %p3982_p9 }
 0x676   :  { %v3872_v50 = vpack.c.bf16 %v2557_v39, %v2556_v46 }
 0x677   :  { %p3985_p12 = pnand %p3984_p11, %p3978_p8 }
 0x678   :  { %3873 = vmatprep.subr.bf16.mxu1 %v3872_v50 }
 0x679   :  { %3875 = vmatpush3.bf16.msra.mxu1 %v3872_v50 }
 0x67c   :  { %3617 = vmatmul.mubr.msk.f32.vlgmr.msra.gmra.mrb[66].mxu1 %vm648_vm4, %v2559_v51 }
 0x67d   :  { %3619 = vmatprep.mubr.msk.f32.mxu1 %vm648_vm4, %v2560_v52 }
 0x680   :  { %3620 = vmatmul.mubr.msk.f32.gmra.mrb[68].mxu1 %vm648_vm4, %v2561_v53 }
 0x681   :  { %3622 = vmatprep.mubr.msk.f32.mxu1 %vm648_vm4, %v2562_v43 }
 0x684   :  { %3623 = vmatmul.mubr.msk.f32.gmra.mrb[70].mxu1 %vm648_vm4, %v2563_v47 }
 0x685   :  { %3625 = vmatprep.mubr.msk.f32.mxu1 %vm648_vm4, %v2564_v48 }
 0x688   :  { %3626 = vmatmul.mubr.msk.f32.gmra.mrb[72].mxu1 %vm648_vm4, %v2565_v49 }
 0x74f   :  { %v3618_v54 = vpop.f32.mrb[66].mxu1 }
 0x750   :  { %v2696_v55 = vmin.f32 %v3618_v54, 0.0  ;;  %v2656_v56 = vpop.f32.mrb[67].mxu1  ;;  %vm2728_vm5 = vcmp.gt.f32.partialorder %v3618_v54, 0.0 }
 0x751   :  { %v2695_v57 = vmin.f32 %v2656_v56, 0.0  ;;  %vm2727_vm6 = vcmp.gt.f32.partialorder %v2656_v56, 0.0 }
 0x752   :  { %v2705_v58 = vmul.f32 1.442695, %v2696_v55 }
 0x753   :  { %v2703_v59 = vmul.f32 1.442695, %v2695_v57  ;;  %v3621_v60 = vpop.f32.mrb[68].mxu1 }
 0x754   :  { %3923 = vpow2.f32 %v2705_v58  ;;  %v2698_v61 = vmin.f32 %v3621_v60, 0.0  ;;  %v2666_v62 = vpop.f32.mrb[69].mxu1  ;;  %vm2730_vm7 = vcmp.gt.f32.partialorder %v3621_v60, 0.0 }
 0x755   :  { %3925 = vpow2.f32 %v2703_v59  ;;  %v2697_v63 = vmin.f32 %v2666_v62, 0.0  ;;  %vm2729_vm8 = vcmp.gt.f32.partialorder %v2666_v62, 0.0 }
 0x756   :  { %v2709_v0 = vmul.f32 1.442695, %v2698_v61 }
 0x757   :  { %v2707_v1 = vmul.f32 1.442695, %v2697_v63  ;;  %v3624_v2 = vpop.f32.mrb[70].mxu1 }
 0x758   :  { %3927 = vpow2.f32 %v2709_v0  ;;  %v2700_v3 = vmin.f32 %v3624_v2, 0.0  ;;  %v2676_v4 = vpop.f32.mrb[71].mxu1  ;;  %vm2732_vm9 = vcmp.gt.f32.partialorder %v3624_v2, 0.0 }
 0x759   :  { %3929 = vpow2.f32 %v2707_v1  ;;  %v2699_v5 = vmin.f32 %v2676_v4, 0.0  ;;  %vm2731_vm10 = vcmp.gt.f32.partialorder %v2676_v4, 0.0 }
 0x75a   :  { %v2713_v6 = vmul.f32 1.442695, %v2700_v3 }
 0x75b   :  { %v2711_v7 = vmul.f32 1.442695, %v2699_v5  ;;  %v3627_v8 = vpop.f32.mrb[72].mxu1 }
 0x75c   :  { %3931 = vpow2.f32 %v2713_v6  ;;  %v2702_v9 = vmin.f32 %v3627_v8, 0.0  ;;  %v2686_v10 = vpop.f32.mrb[73].mxu1  ;;  %vm2734_vm11 = vcmp.gt.f32.partialorder %v3627_v8, 0.0 }
 0x75d   :  { %3933 = vpow2.f32 %v2711_v7  ;;  %v2701_v11 = vmin.f32 %v2686_v10, 0.0  ;;  %vm2733_vm12 = vcmp.gt.f32.partialorder %v2686_v10, 0.0 }
 0x75e   :  { %v3924_v12 = vpop.eup %3923  ;;  %v2717_v13 = vmul.f32 1.442695, %v2702_v9 }
 0x75f   :  { %v3926_v14 = vpop.eup %3925  ;;  %v2955_v15 = vadd.f32 -1.0, %v3924_v12  ;;  %v2715_v16 = vmul.f32 1.442695, %v2701_v11 }
 0x760   :  { %v2954_v17 = vadd.f32 -1.0, %v3926_v14  ;;  %3935 = vpow2.f32 %v2717_v13 }
 0x761   :  { %v2736_v18 = vsel %vm2728_vm5, %v3618_v54, %v2955_v15  ;;  %3937 = vpow2.f32 %v2715_v16 }
 0x762   :  { %v3928_v19 = vpop.eup %3927  ;;  %3939 = vtanh.f32 %v2736_v18  ;;  %v2735_v20 = vsel %vm2727_vm6, %v2656_v56, %v2954_v17 }
 0x763   :  { %v3930_v21 = vpop.eup %3929  ;;  %3941 = vtanh.f32 %v2735_v20  ;;  %v2957_v22 = vadd.f32 -1.0, %v3928_v19 }
 0x764   :  { %v2956_v23 = vadd.f32 -1.0, %v3930_v21 }
 0x765   :  { %v2738_v24 = vsel %vm2730_vm7, %v3621_v60, %v2957_v22 }
 0x766   :  { %v3932_v25 = vpop.eup %3931  ;;  %3943 = vtanh.f32 %v2738_v24  ;;  %v2737_v26 = vsel %vm2729_vm8, %v2666_v62, %v2956_v23 }
 0x767   :  { %v3934_v27 = vpop.eup %3933  ;;  %3945 = vtanh.f32 %v2737_v26  ;;  %v2959_v28 = vadd.f32 -1.0, %v3932_v25 }
 0x768   :  { %v2958_v29 = vadd.f32 -1.0, %v3934_v27 }
 0x769   :  { %v2740_v30 = vsel %vm2732_vm9, %v3624_v2, %v2959_v28 }
 0x76a   :  { %v3936_v31 = vpop.eup %3935  ;;  %3947 = vtanh.f32 %v2740_v30  ;;  %v2739_v32 = vsel %vm2731_vm10, %v2676_v4, %v2958_v29 }
 0x76b   :  { %v3938_v33 = vpop.eup %3937  ;;  %3949 = vtanh.f32 %v2739_v32  ;;  %v2961_v34 = vadd.f32 -1.0, %v3936_v31 }
 0x76c   :  { %v3940_v35 = vpop.eup %3939  ;;  %v2960_v36 = vadd.f32 -1.0, %v3938_v33 }
 0x76d   :  { %v3942_v37 = vpop.eup %3941  ;;  %2752 = vst [vmem:[#allocation5 + $0x8] sm:$0xff] %v3940_v35  ;;  %v2742_v38 = vsel %vm2734_vm11, %v3627_v8, %v2961_v34 }
 0x76e   :  { %2751 = vst [vmem:[#allocation5] sm:$0xff] %v3942_v37  ;;  %3951 = vtanh.f32 %v2742_v38  ;;  %v2741_v40 = vsel %vm2733_vm12, %v2686_v10, %v2960_v36 }
 0x76f   :  { %3953 = vtanh.f32 %v2741_v40 }
 0x770   :  { %v3944_v41 = vpop.eup %3943 }
 0x771   :  { %v3946_v42 = vpop.eup %3945  ;;  %2754 = vst [vmem:[#allocation5 + $0x18] sm:$0xff] %v3944_v41 }
 0x772   :  { %2753 = vst [vmem:[#allocation5 + $0x10] sm:$0xff] %v3946_v42 }
 0x774   :  { %v3948_v44 = vpop.eup %3947 }
 0x775   :  { %v3950_v45 = vpop.eup %3949  ;;  %2756 = vst [vmem:[#allocation5 + $0x28] sm:$0xff] %v3948_v44 }
 0x776   :  { %2755 = vst [vmem:[#allocation5 + $0x20] sm:$0xff] %v3950_v45 }
 0x778   :  { %v3952_v39 = vpop.eup %3951 }
 0x779   :  { %v3954_v46 = vpop.eup %3953  ;;  %2758 = vst [vmem:[#allocation5 + $0x38] sm:$0xff] %v3952_v39 }
 0x77a   :  { %2757 = vst [vmem:[#allocation5 + $0x30] sm:$0xff] %v3954_v46 }
 0x77b   :  { %3988 = shalt.err (!%p3985_p12)
}
 0x77c   :  { %s3989_s26 = scalar_lea.hbm %s4651_s8, 1024 }
 0x77d   :  { %p3990_p13 = scmp.ne.s32.totalorder %s4651_s8, %s3989_s26  ;;  %p3993_p0 = scmp.lt.u32.totalorder %s3989_s26, %s4651_s8 }
 0x77f   :  { %p3995_p1 = pnand %p3993_p0, %p3990_p13 }
 0x781   :  { %3998 = shalt.err (!%p3995_p1)
}
 0x782   :  { %2770 = dma.vmem_to_hbm [thread:$0]  %s2765_s23, 1024, %s4651_s8, [#allocation4], %s4004_s15, %s4004_s15, %s4005_s16  }
 0x783   :  { %4001 = dma.done.wait [#allocation4], 1024  }
 0x784   :  { %4002 = vsyncadd [#allocation4], 4294966272 }
 0x785   :  { %2774 = vsyncpa [#allocation3], 1 }
 0x786   :  { %2775 = vsyncpa [#allocation4], 1 }

</bundles_post_ra>
